<compile_context>
chip_gen: v6e
topology: v6e:2x2x1
jax: 0.10.0
libtpu: 0.0.40
codegen_flags: <defaults>
</compile_context>

<pallas_src>
import math

import jax
import jax.numpy as jnp
from jax.experimental import pallas as pl
from jax.experimental.pallas import tpu as pltpu

# ----- small, module-consistent sizes -------------------------------------
B = 8              # samples per minibatch
DIN = 32           # net input features
DH = 16            # hidden features  (block "l1": weight [DH, DIN])
DOUT = 8           # net output features (block "l2": weight [DOUT, DH])
J = 16             # "batch_size": number of minibatches -> number of loss samples
MC = 4             # "monte_carlo_num" (kept small)
T = 100            # len(testing_vec) = np.linspace(0, 100, 100)
T_PAD = 128        # testing vector padded to a full lane dimension
BW = 0.2           # KDE bandwidth

NAMES = ["l1", "l2"]            # modules that have a .weight
NUM_BLOCKS = len(NAMES)
NUM_STEPS = NUM_BLOCKS * MC     # one (block, epoch) Monte-Carlo step each

ROWS = J * B                    # 128  (all minibatches stacked on sublanes)
NH = NUM_STEPS * DH             # 128  (lane-batched hidden width)
NO = NUM_STEPS * DOUT           # 64   (lane-batched output width)

_NEG_INV_2H2 = -1.0 / (2.0 * BW * BW)
_LOG_NORM = math.log(J * BW * math.sqrt(2.0 * math.pi))
_H_INIT = -100.0                # self.H_max initial value in the PyTorch module


# ---------------------------------------------------------------------------
# Single fused kernel: all (block, epoch) steps + epilogue in one invocation.
#   stage 1: lane-batched 2-layer linear net forward + grouped squared error
#   stage 2: per-step Gaussian-KDE entropy on the test grid (scoped per step)
#   stage 3: per-block running max, clamp at -100, normalize by global max
# ---------------------------------------------------------------------------
def fused_kernel(x_ref, tgt_ref, sel_ref, tv_ref, w1_ref, w2_ref, out_ref):
    # ---- stage 1: all NUM_STEPS networks batched along the lane dim --------
    x = x_ref[...]                                                    # [128, 32]
    h = jnp.dot(x, w1_ref[...], preferred_element_type=jnp.float32)   # [128, 128]
    y = jnp.dot(h, w2_ref[...], preferred_element_type=jnp.float32)   # [128, 64]
    sq = (y - tgt_ref[...]) ** 2                                      # [128, 64]
    # grouped sum over the B rows of each minibatch via a 0/1 selector matmul
    # (avoids an in-kernel sublane->lane reshape)
    grp = jnp.dot(sel_ref[...], sq, preferred_element_type=jnp.float32)  # [16, 64]

    # ---- stage 2: per-step KDE entropy (sklearn gaussian KDE, bw=0.2) ------
    #   log p(t) = logsumexp_j( -(t - x_j)^2 / (2 h^2) ) - log(N h sqrt(2 pi))
    #   contrib(t) = -exp(log p(t)) * log p(t);  H = sum_t contrib(t)
    tv = tv_ref[...]                                                  # [1, 128]
    lane = jax.lax.broadcasted_iota(jnp.int32, (1, T_PAD), 1)
    valid = lane < T                                                  # pad-lane mask

    H_steps = []
    for e in range(NUM_STEPS):   # static unroll; each step reduces to [1,1]
        # per-minibatch MSE for step e (mean over B*DOUT elements)     [J, 1]
        loss_e = jnp.sum(grp[:, e * DOUT:(e + 1) * DOUT], axis=1,
                         keepdims=True) * (1.0 / (B * DOUT))
        d = loss_e - tv                                               # [J, 128]
        logk = (d * d) * _NEG_INV_2H2                                 # [J, 128]
        m = jnp.max(logk, axis=0, keepdims=True)                      # [1, 128]
        s = jnp.sum(jnp.exp(logk - m), axis=0, keepdims=True)         # [1, 128]
        logp = m + jnp.log(s) - _LOG_NORM                             # [1, 128]
        # pad lanes masked on the OUTPUT only (logp stays finite there)
        contrib = jnp.where(valid, -jnp.exp(logp) * logp, 0.0)
        H_steps.append(jnp.sum(contrib, axis=1, keepdims=True))       # [1, 1]

    # ---- stage 3: folded epilogue (was a separate XLA dispatch before) -----
    H_blocks = []
    for i in range(NUM_BLOCKS):
        h_max = jnp.full((1, 1), _H_INIT, jnp.float32)                # H_max init
        for epoch in range(MC):
            h_max = jnp.maximum(h_max, H_steps[i * MC + epoch])
        H_blocks.append(h_max)
    h_all = H_blocks[0]
    for i in range(1, NUM_BLOCKS):
        h_all = jnp.maximum(h_all, H_blocks[i])

    row = jnp.zeros((1, T_PAD), jnp.float32)
    for i in range(NUM_BLOCKS):
        row = jnp.where(lane == i, H_blocks[i] / h_all, row)          # H_max/max
    out_ref[...] = row            # one lane-dense [1, 128] unmasked store


@jax.jit
def block_entropy_forward(x, tgt_tiled, sel, tv_pad, w1_cat, w2_bd):
    # Single grid step; every operand is a whole-array VMEM-resident block, so
    # there are no per-step weight DMAs and no per-step writebacks.
    return pl.pallas_call(
        fused_kernel,
        out_shape=jax.ShapeDtypeStruct((1, T_PAD), jnp.float32),
        grid=(1,),
        in_specs=[
            pl.BlockSpec((ROWS, DIN), lambda i: (0, 0)),    # x
            pl.BlockSpec((ROWS, NO), lambda i: (0, 0)),     # targets tiled per step
            pl.BlockSpec((J, ROWS), lambda i: (0, 0)),      # minibatch selector
            pl.BlockSpec((1, T_PAD), lambda i: (0, 0)),     # padded testing vec
            pl.BlockSpec((DIN, NH), lambda i: (0, 0)),      # concat of all W1^T
            pl.BlockSpec((NH, NO), lambda i: (0, 0)),       # block-diag of all W2^T
        ],
        out_specs=pl.BlockSpec((1, T_PAD), lambda i: (0, 0)),
        compiler_params=pltpu.CompilerParams(
            dimension_semantics=("arbitrary",)),
    )(x, tgt_tiled, sel, tv_pad, w1_cat, w2_bd)


# ---------------------------------------------------------------------------
# Glue: deterministic kaiming_normal_ init and batched operand construction.
# ---------------------------------------------------------------------------
def kaiming_normal(key, shape):
    fan_in = shape[1]
    return jax.random.normal(key, shape, jnp.float32) * math.sqrt(2.0 / fan_in)


def _reference(x, tgt, sel, tv, w1_t_list, w2_t_list):
    """Pure-JAX reference of the per-step math (loose sanity check)."""
    Hs = []
    for e in range(NUM_STEPS):
        y = (x @ w1_t_list[e]) @ w2_t_list[e]
        sq = (y - tgt) ** 2
        loss = jnp.sum(sel @ sq, axis=-1) / (B * DOUT)                 # [J]
        d = loss[:, None] - tv[None, :]
        logk = -(d * d) / (2.0 * BW * BW)
        logp = jax.scipy.special.logsumexp(logk, axis=0) - _LOG_NORM
        Hs.append(-jnp.sum(jnp.exp(logp) * logp))
    H = jnp.stack(Hs).reshape(NUM_BLOCKS, MC).max(axis=-1)
    H = jnp.maximum(H, _H_INIT)
    return H / jnp.max(H)


if __name__ == "__main__":
    key = jax.random.PRNGKey(0)
    k_in, k_tg, k_w1, k_w2, k_mc = jax.random.split(key, 5)

    # deterministic "input_generator": J minibatches of (inputs, targets)
    x = jax.random.normal(k_in, (ROWS, DIN), jnp.float32)
    tgt = jax.random.normal(k_tg, (ROWS, DOUT), jnp.float32)

    # 0/1 selector matrix: sel[j, r] = 1 iff row r belongs to minibatch j
    rows = jnp.arange(ROWS) // B
    sel = (rows[None, :] == jnp.arange(J)[:, None]).astype(jnp.float32)  # [J, 128]

    # testing_vec = np.linspace(0, 100, 100), padded to 128 lanes (masked in-kernel)
    tv = jnp.linspace(0.0, 100.0, T).astype(jnp.float32)
    tv_pad = jnp.zeros((1, T_PAD), jnp.float32).at[0, :T].set(tv)

    # init_net(): deterministic base weights for both blocks
    base_w1 = kaiming_normal(k_w1, (DH, DIN))
    base_w2 = kaiming_normal(k_w2, (DOUT, DH))

    # change_block_weights(): per-(block, epoch) weights, pre-transposed for
    # the MXU ([in, out] layout).
    w1_t_list, w2_t_list = [], []
    for i, blk in enumerate(NAMES):
        for epoch in range(MC):
            pk = jax.random.fold_in(jax.random.fold_in(k_mc, i), epoch)
            if blk == "l1":
                w1, w2 = kaiming_normal(pk, (DH, DIN)), base_w2
            else:
                w1, w2 = base_w1, kaiming_normal(pk, (DOUT, DH))
            w1_t_list.append(w1.T)   # [DIN, DH]
            w2_t_list.append(w2.T)   # [DH, DOUT]

    # Lane-batched MXU operands:
    #   all W1^T side by side          -> [DIN, NUM_STEPS*DH]  = [32, 128]
    w1_cat = jnp.concatenate(w1_t_list, axis=1)
    #   all W2^T on the block diagonal -> [NUM_STEPS*DH, NUM_STEPS*DOUT] = [128, 64]
    w2_bd = jnp.zeros((NH, NO), jnp.float32)
    for e in range(NUM_STEPS):
        w2_bd = w2_bd.at[e * DH:(e + 1) * DH, e * DOUT:(e + 1) * DOUT].set(w2_t_list[e])
    #   targets tiled once per step along lanes -> [128, 64]
    tgt_tiled = jnp.tile(tgt, (1, NUM_STEPS))

    row = block_entropy_forward(x, tgt_tiled, sel, tv_pad, w1_cat, w2_bd)
    jax.block_until_ready(row)

    result = row[0, :NUM_BLOCKS]                       # H_max / max(H_max)
    ref = _reference(x, tgt, sel, tv, w1_t_list, w2_t_list)
    assert bool(jnp.all(jnp.isfinite(row)))
    assert bool(jnp.allclose(result, ref, rtol=5e-2, atol=1e-3)), (result, ref)

    print("KERNEL_OK")
</pallas_src>

<mosaic_0001>
module attributes {stable_mosaic.version = 11 : i64} {
  func.func @fused_kernel(%arg0: i32, %arg1: memref<128x32xf32, #tpu.memory_space<vmem>>, %arg2: memref<128x64xf32, #tpu.memory_space<vmem>>, %arg3: memref<16x128xf32, #tpu.memory_space<vmem>>, %arg4: memref<1x128xf32, #tpu.memory_space<vmem>>, %arg5: memref<32x128xf32, #tpu.memory_space<vmem>>, %arg6: memref<128x64xf32, #tpu.memory_space<vmem>>, %arg7: memref<1x128xf32, #tpu.memory_space<vmem>>) attributes {dimension_semantics = [#tpu.dimension_semantics<arbitrary>], iteration_bounds = array<i64: 1>, scalar_prefetch = 0 : i64, scratch_operands = 0 : i64, tpu.core_type = #tpu.core_type<tc>, window_params = [{pipeline_mode = #tpu.pipeline_mode<synchronous>, transform_indices = @transform_0, window_bounds = array<i64: 128, 32>}, {pipeline_mode = #tpu.pipeline_mode<synchronous>, transform_indices = @transform_1, window_bounds = array<i64: 128, 64>}, {pipeline_mode = #tpu.pipeline_mode<synchronous>, transform_indices = @transform_2, window_bounds = array<i64: 16, 128>}, {pipeline_mode = #tpu.pipeline_mode<synchronous>, transform_indices = @transform_3, window_bounds = array<i64: 1, 128>}, {pipeline_mode = #tpu.pipeline_mode<synchronous>, transform_indices = @transform_4, window_bounds = array<i64: 32, 128>}, {pipeline_mode = #tpu.pipeline_mode<synchronous>, transform_indices = @transform_5, window_bounds = array<i64: 128, 64>}, {pipeline_mode = #tpu.pipeline_mode<synchronous>, transform_indices = @transform_6, window_bounds = array<i64: 1, 128>}]} {
    %c0 = arith.constant 0 : index
    %c0_0 = arith.constant 0 : index
    %0 = vector.load %arg1[%c0, %c0_0] : memref<128x32xf32, #tpu.memory_space<vmem>>, vector<128x32xf32>
    %c0_1 = arith.constant 0 : index
    %c0_2 = arith.constant 0 : index
    %1 = vector.load %arg5[%c0_1, %c0_2] : memref<32x128xf32, #tpu.memory_space<vmem>>, vector<32x128xf32>
    %cst = arith.constant dense<0.000000e+00> : vector<128x128xf32>
    %2 = tpu.matmul %0, %1, %cst {dimension_numbers = #tpu.dot_dimension_numbers<[1], [0], [0], [1], [0, 0, 1, 1], [], []>} : vector<128x32xf32>, vector<32x128xf32>, vector<128x128xf32> -> vector<128x128xf32>
    %c0_3 = arith.constant 0 : index
    %c0_4 = arith.constant 0 : index
    %3 = vector.load %arg6[%c0_3, %c0_4] : memref<128x64xf32, #tpu.memory_space<vmem>>, vector<128x64xf32>
    %cst_5 = arith.constant dense<0.000000e+00> : vector<128x64xf32>
    %4 = tpu.matmul %2, %3, %cst_5 {dimension_numbers = #tpu.dot_dimension_numbers<[1], [0], [0], [1], [0, 0, 1, 1], [], []>} : vector<128x128xf32>, vector<128x64xf32>, vector<128x64xf32> -> vector<128x64xf32>
    %c0_6 = arith.constant 0 : index
    %c0_7 = arith.constant 0 : index
    %5 = vector.load %arg2[%c0_6, %c0_7] : memref<128x64xf32, #tpu.memory_space<vmem>>, vector<128x64xf32>
    %6 = arith.subf %4, %5 : vector<128x64xf32>
    %7 = arith.mulf %6, %6 : vector<128x64xf32>
    %c0_8 = arith.constant 0 : index
    %c0_9 = arith.constant 0 : index
    %8 = vector.load %arg3[%c0_8, %c0_9] : memref<16x128xf32, #tpu.memory_space<vmem>>, vector<16x128xf32>
    %cst_10 = arith.constant dense<0.000000e+00> : vector<16x64xf32>
    %9 = tpu.matmul %8, %7, %cst_10 {dimension_numbers = #tpu.dot_dimension_numbers<[1], [0], [0], [1], [0, 0, 1, 1], [], []>} : vector<16x128xf32>, vector<128x64xf32>, vector<16x64xf32> -> vector<16x64xf32>
    %c0_11 = arith.constant 0 : index
    %c0_12 = arith.constant 0 : index
    %10 = vector.load %arg4[%c0_11, %c0_12] : memref<1x128xf32, #tpu.memory_space<vmem>>, vector<1x128xf32>
    %11 = tpu.iota {dimensions = array<i32: 1>} : vector<1x128xi32>
    %c100_i32 = arith.constant 100 : i32
    %12 = vector.broadcast %c100_i32 : i32 to vector<1x128xi32>
    %13 = arith.cmpi slt, %11, %12 : vector<1x128xi32>
    %14 = vector.extract_strided_slice %9 {offsets = [0, 0], sizes = [16, 8], strides = [1, 1]} : vector<16x64xf32> to vector<16x8xf32>
    %cst_13 = arith.constant dense<0.000000e+00> : vector<16xf32>
    %15 = vector.multi_reduction <add>, %14, %cst_13 [1] : vector<16x8xf32> to vector<16xf32>
    %16 = vector.shape_cast %15 : vector<16xf32> to vector<16x1xf32>
    %cst_14 = arith.constant 1.562500e-02 : f32
    %17 = vector.broadcast %cst_14 : f32 to vector<16x1xf32>
    %18 = arith.mulf %16, %17 : vector<16x1xf32>
    %19 = vector.broadcast %18 : vector<16x1xf32> to vector<16x128xf32>
    %20 = vector.broadcast %10 : vector<1x128xf32> to vector<16x128xf32>
    %21 = arith.subf %19, %20 : vector<16x128xf32>
    %22 = arith.mulf %21, %21 : vector<16x128xf32>
    %cst_15 = arith.constant -1.250000e+01 : f32
    %23 = vector.broadcast %cst_15 : f32 to vector<16x128xf32>
    %24 = arith.mulf %22, %23 : vector<16x128xf32>
    %cst_16 = arith.constant dense<0xFF800000> : vector<128xf32>
    %25 = vector.multi_reduction <maximumf>, %24, %cst_16 [0] : vector<16x128xf32> to vector<128xf32>
    %26 = vector.shape_cast %25 : vector<128xf32> to vector<1x128xf32>
    %27 = vector.broadcast %26 : vector<1x128xf32> to vector<16x128xf32>
    %28 = arith.subf %24, %27 : vector<16x128xf32>
    %29 = math.exp %28 : vector<16x128xf32>
    %cst_17 = arith.constant dense<0.000000e+00> : vector<128xf32>
    %30 = vector.multi_reduction <add>, %29, %cst_17 [0] : vector<16x128xf32> to vector<128xf32>
    %31 = vector.shape_cast %30 : vector<128xf32> to vector<1x128xf32>
    %32 = math.log %31 : vector<1x128xf32>
    %33 = arith.addf %26, %32 : vector<1x128xf32>
    %cst_18 = arith.constant 2.08208942 : f32
    %34 = vector.broadcast %cst_18 : f32 to vector<1x128xf32>
    %35 = arith.subf %33, %34 : vector<1x128xf32>
    %36 = math.exp %35 : vector<1x128xf32>
    %cst_19 = arith.constant 0.000000e+00 : f32
    %37 = vector.broadcast %cst_19 : f32 to vector<1x128xf32>
    %38 = arith.subf %37, %36 : vector<1x128xf32>
    %39 = arith.mulf %38, %35 : vector<1x128xf32>
    %cst_20 = arith.constant 0.000000e+00 : f32
    %40 = vector.broadcast %cst_20 : f32 to vector<1x128xf32>
    %41 = arith.select %13, %39, %40 : vector<1x128xi1>, vector<1x128xf32>
    %cst_21 = arith.constant dense<0.000000e+00> : vector<1xf32>
    %42 = vector.multi_reduction <add>, %41, %cst_21 [1] : vector<1x128xf32> to vector<1xf32>
    %43 = vector.shape_cast %42 : vector<1xf32> to vector<1x1xf32>
    %44 = vector.extract_strided_slice %9 {offsets = [0, 8], sizes = [16, 8], strides = [1, 1]} : vector<16x64xf32> to vector<16x8xf32>
    %cst_22 = arith.constant dense<0.000000e+00> : vector<16xf32>
    %45 = vector.multi_reduction <add>, %44, %cst_22 [1] : vector<16x8xf32> to vector<16xf32>
    %46 = vector.shape_cast %45 : vector<16xf32> to vector<16x1xf32>
    %cst_23 = arith.constant 1.562500e-02 : f32
    %47 = vector.broadcast %cst_23 : f32 to vector<16x1xf32>
    %48 = arith.mulf %46, %47 : vector<16x1xf32>
    %49 = vector.broadcast %48 : vector<16x1xf32> to vector<16x128xf32>
    %50 = vector.broadcast %10 : vector<1x128xf32> to vector<16x128xf32>
    %51 = arith.subf %49, %50 : vector<16x128xf32>
    %52 = arith.mulf %51, %51 : vector<16x128xf32>
    %cst_24 = arith.constant -1.250000e+01 : f32
    %53 = vector.broadcast %cst_24 : f32 to vector<16x128xf32>
    %54 = arith.mulf %52, %53 : vector<16x128xf32>
    %cst_25 = arith.constant dense<0xFF800000> : vector<128xf32>
    %55 = vector.multi_reduction <maximumf>, %54, %cst_25 [0] : vector<16x128xf32> to vector<128xf32>
    %56 = vector.shape_cast %55 : vector<128xf32> to vector<1x128xf32>
    %57 = vector.broadcast %56 : vector<1x128xf32> to vector<16x128xf32>
    %58 = arith.subf %54, %57 : vector<16x128xf32>
    %59 = math.exp %58 : vector<16x128xf32>
    %cst_26 = arith.constant dense<0.000000e+00> : vector<128xf32>
    %60 = vector.multi_reduction <add>, %59, %cst_26 [0] : vector<16x128xf32> to vector<128xf32>
    %61 = vector.shape_cast %60 : vector<128xf32> to vector<1x128xf32>
    %62 = math.log %61 : vector<1x128xf32>
    %63 = arith.addf %56, %62 : vector<1x128xf32>
    %cst_27 = arith.constant 2.08208942 : f32
    %64 = vector.broadcast %cst_27 : f32 to vector<1x128xf32>
    %65 = arith.subf %63, %64 : vector<1x128xf32>
    %66 = math.exp %65 : vector<1x128xf32>
    %cst_28 = arith.constant 0.000000e+00 : f32
    %67 = vector.broadcast %cst_28 : f32 to vector<1x128xf32>
    %68 = arith.subf %67, %66 : vector<1x128xf32>
    %69 = arith.mulf %68, %65 : vector<1x128xf32>
    %cst_29 = arith.constant 0.000000e+00 : f32
    %70 = vector.broadcast %cst_29 : f32 to vector<1x128xf32>
    %71 = arith.select %13, %69, %70 : vector<1x128xi1>, vector<1x128xf32>
    %cst_30 = arith.constant dense<0.000000e+00> : vector<1xf32>
    %72 = vector.multi_reduction <add>, %71, %cst_30 [1] : vector<1x128xf32> to vector<1xf32>
    %73 = vector.shape_cast %72 : vector<1xf32> to vector<1x1xf32>
    %74 = vector.extract_strided_slice %9 {offsets = [0, 16], sizes = [16, 8], strides = [1, 1]} : vector<16x64xf32> to vector<16x8xf32>
    %cst_31 = arith.constant dense<0.000000e+00> : vector<16xf32>
    %75 = vector.multi_reduction <add>, %74, %cst_31 [1] : vector<16x8xf32> to vector<16xf32>
    %76 = vector.shape_cast %75 : vector<16xf32> to vector<16x1xf32>
    %cst_32 = arith.constant 1.562500e-02 : f32
    %77 = vector.broadcast %cst_32 : f32 to vector<16x1xf32>
    %78 = arith.mulf %76, %77 : vector<16x1xf32>
    %79 = vector.broadcast %78 : vector<16x1xf32> to vector<16x128xf32>
    %80 = vector.broadcast %10 : vector<1x128xf32> to vector<16x128xf32>
    %81 = arith.subf %79, %80 : vector<16x128xf32>
    %82 = arith.mulf %81, %81 : vector<16x128xf32>
    %cst_33 = arith.constant -1.250000e+01 : f32
    %83 = vector.broadcast %cst_33 : f32 to vector<16x128xf32>
    %84 = arith.mulf %82, %83 : vector<16x128xf32>
    %cst_34 = arith.constant dense<0xFF800000> : vector<128xf32>
    %85 = vector.multi_reduction <maximumf>, %84, %cst_34 [0] : vector<16x128xf32> to vector<128xf32>
    %86 = vector.shape_cast %85 : vector<128xf32> to vector<1x128xf32>
    %87 = vector.broadcast %86 : vector<1x128xf32> to vector<16x128xf32>
    %88 = arith.subf %84, %87 : vector<16x128xf32>
    %89 = math.exp %88 : vector<16x128xf32>
    %cst_35 = arith.constant dense<0.000000e+00> : vector<128xf32>
    %90 = vector.multi_reduction <add>, %89, %cst_35 [0] : vector<16x128xf32> to vector<128xf32>
    %91 = vector.shape_cast %90 : vector<128xf32> to vector<1x128xf32>
    %92 = math.log %91 : vector<1x128xf32>
    %93 = arith.addf %86, %92 : vector<1x128xf32>
    %cst_36 = arith.constant 2.08208942 : f32
    %94 = vector.broadcast %cst_36 : f32 to vector<1x128xf32>
    %95 = arith.subf %93, %94 : vector<1x128xf32>
    %96 = math.exp %95 : vector<1x128xf32>
    %cst_37 = arith.constant 0.000000e+00 : f32
    %97 = vector.broadcast %cst_37 : f32 to vector<1x128xf32>
    %98 = arith.subf %97, %96 : vector<1x128xf32>
    %99 = arith.mulf %98, %95 : vector<1x128xf32>
    %cst_38 = arith.constant 0.000000e+00 : f32
    %100 = vector.broadcast %cst_38 : f32 to vector<1x128xf32>
    %101 = arith.select %13, %99, %100 : vector<1x128xi1>, vector<1x128xf32>
    %cst_39 = arith.constant dense<0.000000e+00> : vector<1xf32>
    %102 = vector.multi_reduction <add>, %101, %cst_39 [1] : vector<1x128xf32> to vector<1xf32>
    %103 = vector.shape_cast %102 : vector<1xf32> to vector<1x1xf32>
    %104 = vector.extract_strided_slice %9 {offsets = [0, 24], sizes = [16, 8], strides = [1, 1]} : vector<16x64xf32> to vector<16x8xf32>
    %cst_40 = arith.constant dense<0.000000e+00> : vector<16xf32>
    %105 = vector.multi_reduction <add>, %104, %cst_40 [1] : vector<16x8xf32> to vector<16xf32>
    %106 = vector.shape_cast %105 : vector<16xf32> to vector<16x1xf32>
    %cst_41 = arith.constant 1.562500e-02 : f32
    %107 = vector.broadcast %cst_41 : f32 to vector<16x1xf32>
    %108 = arith.mulf %106, %107 : vector<16x1xf32>
    %109 = vector.broadcast %108 : vector<16x1xf32> to vector<16x128xf32>
    %110 = vector.broadcast %10 : vector<1x128xf32> to vector<16x128xf32>
    %111 = arith.subf %109, %110 : vector<16x128xf32>
    %112 = arith.mulf %111, %111 : vector<16x128xf32>
    %cst_42 = arith.constant -1.250000e+01 : f32
    %113 = vector.broadcast %cst_42 : f32 to vector<16x128xf32>
    %114 = arith.mulf %112, %113 : vector<16x128xf32>
    %cst_43 = arith.constant dense<0xFF800000> : vector<128xf32>
    %115 = vector.multi_reduction <maximumf>, %114, %cst_43 [0] : vector<16x128xf32> to vector<128xf32>
    %116 = vector.shape_cast %115 : vector<128xf32> to vector<1x128xf32>
    %117 = vector.broadcast %116 : vector<1x128xf32> to vector<16x128xf32>
    %118 = arith.subf %114, %117 : vector<16x128xf32>
    %119 = math.exp %118 : vector<16x128xf32>
    %cst_44 = arith.constant dense<0.000000e+00> : vector<128xf32>
    %120 = vector.multi_reduction <add>, %119, %cst_44 [0] : vector<16x128xf32> to vector<128xf32>
    %121 = vector.shape_cast %120 : vector<128xf32> to vector<1x128xf32>
    %122 = math.log %121 : vector<1x128xf32>
    %123 = arith.addf %116, %122 : vector<1x128xf32>
    %cst_45 = arith.constant 2.08208942 : f32
    %124 = vector.broadcast %cst_45 : f32 to vector<1x128xf32>
    %125 = arith.subf %123, %124 : vector<1x128xf32>
    %126 = math.exp %125 : vector<1x128xf32>
    %cst_46 = arith.constant 0.000000e+00 : f32
    %127 = vector.broadcast %cst_46 : f32 to vector<1x128xf32>
    %128 = arith.subf %127, %126 : vector<1x128xf32>
    %129 = arith.mulf %128, %125 : vector<1x128xf32>
    %cst_47 = arith.constant 0.000000e+00 : f32
    %130 = vector.broadcast %cst_47 : f32 to vector<1x128xf32>
    %131 = arith.select %13, %129, %130 : vector<1x128xi1>, vector<1x128xf32>
    %cst_48 = arith.constant dense<0.000000e+00> : vector<1xf32>
    %132 = vector.multi_reduction <add>, %131, %cst_48 [1] : vector<1x128xf32> to vector<1xf32>
    %133 = vector.shape_cast %132 : vector<1xf32> to vector<1x1xf32>
    %134 = vector.extract_strided_slice %9 {offsets = [0, 32], sizes = [16, 8], strides = [1, 1]} : vector<16x64xf32> to vector<16x8xf32>
    %cst_49 = arith.constant dense<0.000000e+00> : vector<16xf32>
    %135 = vector.multi_reduction <add>, %134, %cst_49 [1] : vector<16x8xf32> to vector<16xf32>
    %136 = vector.shape_cast %135 : vector<16xf32> to vector<16x1xf32>
    %cst_50 = arith.constant 1.562500e-02 : f32
    %137 = vector.broadcast %cst_50 : f32 to vector<16x1xf32>
    %138 = arith.mulf %136, %137 : vector<16x1xf32>
    %139 = vector.broadcast %138 : vector<16x1xf32> to vector<16x128xf32>
    %140 = vector.broadcast %10 : vector<1x128xf32> to vector<16x128xf32>
    %141 = arith.subf %139, %140 : vector<16x128xf32>
    %142 = arith.mulf %141, %141 : vector<16x128xf32>
    %cst_51 = arith.constant -1.250000e+01 : f32
    %143 = vector.broadcast %cst_51 : f32 to vector<16x128xf32>
    %144 = arith.mulf %142, %143 : vector<16x128xf32>
    %cst_52 = arith.constant dense<0xFF800000> : vector<128xf32>
    %145 = vector.multi_reduction <maximumf>, %144, %cst_52 [0] : vector<16x128xf32> to vector<128xf32>
    %146 = vector.shape_cast %145 : vector<128xf32> to vector<1x128xf32>
    %147 = vector.broadcast %146 : vector<1x128xf32> to vector<16x128xf32>
    %148 = arith.subf %144, %147 : vector<16x128xf32>
    %149 = math.exp %148 : vector<16x128xf32>
    %cst_53 = arith.constant dense<0.000000e+00> : vector<128xf32>
    %150 = vector.multi_reduction <add>, %149, %cst_53 [0] : vector<16x128xf32> to vector<128xf32>
    %151 = vector.shape_cast %150 : vector<128xf32> to vector<1x128xf32>
    %152 = math.log %151 : vector<1x128xf32>
    %153 = arith.addf %146, %152 : vector<1x128xf32>
    %cst_54 = arith.constant 2.08208942 : f32
    %154 = vector.broadcast %cst_54 : f32 to vector<1x128xf32>
    %155 = arith.subf %153, %154 : vector<1x128xf32>
    %156 = math.exp %155 : vector<1x128xf32>
    %cst_55 = arith.constant 0.000000e+00 : f32
    %157 = vector.broadcast %cst_55 : f32 to vector<1x128xf32>
    %158 = arith.subf %157, %156 : vector<1x128xf32>
    %159 = arith.mulf %158, %155 : vector<1x128xf32>
    %cst_56 = arith.constant 0.000000e+00 : f32
    %160 = vector.broadcast %cst_56 : f32 to vector<1x128xf32>
    %161 = arith.select %13, %159, %160 : vector<1x128xi1>, vector<1x128xf32>
    %cst_57 = arith.constant dense<0.000000e+00> : vector<1xf32>
    %162 = vector.multi_reduction <add>, %161, %cst_57 [1] : vector<1x128xf32> to vector<1xf32>
    %163 = vector.shape_cast %162 : vector<1xf32> to vector<1x1xf32>
    %164 = vector.extract_strided_slice %9 {offsets = [0, 40], sizes = [16, 8], strides = [1, 1]} : vector<16x64xf32> to vector<16x8xf32>
    %cst_58 = arith.constant dense<0.000000e+00> : vector<16xf32>
    %165 = vector.multi_reduction <add>, %164, %cst_58 [1] : vector<16x8xf32> to vector<16xf32>
    %166 = vector.shape_cast %165 : vector<16xf32> to vector<16x1xf32>
    %cst_59 = arith.constant 1.562500e-02 : f32
    %167 = vector.broadcast %cst_59 : f32 to vector<16x1xf32>
    %168 = arith.mulf %166, %167 : vector<16x1xf32>
    %169 = vector.broadcast %168 : vector<16x1xf32> to vector<16x128xf32>
    %170 = vector.broadcast %10 : vector<1x128xf32> to vector<16x128xf32>
    %171 = arith.subf %169, %170 : vector<16x128xf32>
    %172 = arith.mulf %171, %171 : vector<16x128xf32>
    %cst_60 = arith.constant -1.250000e+01 : f32
    %173 = vector.broadcast %cst_60 : f32 to vector<16x128xf32>
    %174 = arith.mulf %172, %173 : vector<16x128xf32>
    %cst_61 = arith.constant dense<0xFF800000> : vector<128xf32>
    %175 = vector.multi_reduction <maximumf>, %174, %cst_61 [0] : vector<16x128xf32> to vector<128xf32>
    %176 = vector.shape_cast %175 : vector<128xf32> to vector<1x128xf32>
    %177 = vector.broadcast %176 : vector<1x128xf32> to vector<16x128xf32>
    %178 = arith.subf %174, %177 : vector<16x128xf32>
    %179 = math.exp %178 : vector<16x128xf32>
    %cst_62 = arith.constant dense<0.000000e+00> : vector<128xf32>
    %180 = vector.multi_reduction <add>, %179, %cst_62 [0] : vector<16x128xf32> to vector<128xf32>
    %181 = vector.shape_cast %180 : vector<128xf32> to vector<1x128xf32>
    %182 = math.log %181 : vector<1x128xf32>
    %183 = arith.addf %176, %182 : vector<1x128xf32>
    %cst_63 = arith.constant 2.08208942 : f32
    %184 = vector.broadcast %cst_63 : f32 to vector<1x128xf32>
    %185 = arith.subf %183, %184 : vector<1x128xf32>
    %186 = math.exp %185 : vector<1x128xf32>
    %cst_64 = arith.constant 0.000000e+00 : f32
    %187 = vector.broadcast %cst_64 : f32 to vector<1x128xf32>
    %188 = arith.subf %187, %186 : vector<1x128xf32>
    %189 = arith.mulf %188, %185 : vector<1x128xf32>
    %cst_65 = arith.constant 0.000000e+00 : f32
    %190 = vector.broadcast %cst_65 : f32 to vector<1x128xf32>
    %191 = arith.select %13, %189, %190 : vector<1x128xi1>, vector<1x128xf32>
    %cst_66 = arith.constant dense<0.000000e+00> : vector<1xf32>
    %192 = vector.multi_reduction <add>, %191, %cst_66 [1] : vector<1x128xf32> to vector<1xf32>
    %193 = vector.shape_cast %192 : vector<1xf32> to vector<1x1xf32>
    %194 = vector.extract_strided_slice %9 {offsets = [0, 48], sizes = [16, 8], strides = [1, 1]} : vector<16x64xf32> to vector<16x8xf32>
    %cst_67 = arith.constant dense<0.000000e+00> : vector<16xf32>
    %195 = vector.multi_reduction <add>, %194, %cst_67 [1] : vector<16x8xf32> to vector<16xf32>
    %196 = vector.shape_cast %195 : vector<16xf32> to vector<16x1xf32>
    %cst_68 = arith.constant 1.562500e-02 : f32
    %197 = vector.broadcast %cst_68 : f32 to vector<16x1xf32>
    %198 = arith.mulf %196, %197 : vector<16x1xf32>
    %199 = vector.broadcast %198 : vector<16x1xf32> to vector<16x128xf32>
    %200 = vector.broadcast %10 : vector<1x128xf32> to vector<16x128xf32>
    %201 = arith.subf %199, %200 : vector<16x128xf32>
    %202 = arith.mulf %201, %201 : vector<16x128xf32>
    %cst_69 = arith.constant -1.250000e+01 : f32
    %203 = vector.broadcast %cst_69 : f32 to vector<16x128xf32>
    %204 = arith.mulf %202, %203 : vector<16x128xf32>
    %cst_70 = arith.constant dense<0xFF800000> : vector<128xf32>
    %205 = vector.multi_reduction <maximumf>, %204, %cst_70 [0] : vector<16x128xf32> to vector<128xf32>
    %206 = vector.shape_cast %205 : vector<128xf32> to vector<1x128xf32>
    %207 = vector.broadcast %206 : vector<1x128xf32> to vector<16x128xf32>
    %208 = arith.subf %204, %207 : vector<16x128xf32>
    %209 = math.exp %208 : vector<16x128xf32>
    %cst_71 = arith.constant dense<0.000000e+00> : vector<128xf32>
    %210 = vector.multi_reduction <add>, %209, %cst_71 [0] : vector<16x128xf32> to vector<128xf32>
    %211 = vector.shape_cast %210 : vector<128xf32> to vector<1x128xf32>
    %212 = math.log %211 : vector<1x128xf32>
    %213 = arith.addf %206, %212 : vector<1x128xf32>
    %cst_72 = arith.constant 2.08208942 : f32
    %214 = vector.broadcast %cst_72 : f32 to vector<1x128xf32>
    %215 = arith.subf %213, %214 : vector<1x128xf32>
    %216 = math.exp %215 : vector<1x128xf32>
    %cst_73 = arith.constant 0.000000e+00 : f32
    %217 = vector.broadcast %cst_73 : f32 to vector<1x128xf32>
    %218 = arith.subf %217, %216 : vector<1x128xf32>
    %219 = arith.mulf %218, %215 : vector<1x128xf32>
    %cst_74 = arith.constant 0.000000e+00 : f32
    %220 = vector.broadcast %cst_74 : f32 to vector<1x128xf32>
    %221 = arith.select %13, %219, %220 : vector<1x128xi1>, vector<1x128xf32>
    %cst_75 = arith.constant dense<0.000000e+00> : vector<1xf32>
    %222 = vector.multi_reduction <add>, %221, %cst_75 [1] : vector<1x128xf32> to vector<1xf32>
    %223 = vector.shape_cast %222 : vector<1xf32> to vector<1x1xf32>
    %224 = vector.extract_strided_slice %9 {offsets = [0, 56], sizes = [16, 8], strides = [1, 1]} : vector<16x64xf32> to vector<16x8xf32>
    %cst_76 = arith.constant dense<0.000000e+00> : vector<16xf32>
    %225 = vector.multi_reduction <add>, %224, %cst_76 [1] : vector<16x8xf32> to vector<16xf32>
    %226 = vector.shape_cast %225 : vector<16xf32> to vector<16x1xf32>
    %cst_77 = arith.constant 1.562500e-02 : f32
    %227 = vector.broadcast %cst_77 : f32 to vector<16x1xf32>
    %228 = arith.mulf %226, %227 : vector<16x1xf32>
    %229 = vector.broadcast %228 : vector<16x1xf32> to vector<16x128xf32>
    %230 = vector.broadcast %10 : vector<1x128xf32> to vector<16x128xf32>
    %231 = arith.subf %229, %230 : vector<16x128xf32>
    %232 = arith.mulf %231, %231 : vector<16x128xf32>
    %cst_78 = arith.constant -1.250000e+01 : f32
    %233 = vector.broadcast %cst_78 : f32 to vector<16x128xf32>
    %234 = arith.mulf %232, %233 : vector<16x128xf32>
    %cst_79 = arith.constant dense<0xFF800000> : vector<128xf32>
    %235 = vector.multi_reduction <maximumf>, %234, %cst_79 [0] : vector<16x128xf32> to vector<128xf32>
    %236 = vector.shape_cast %235 : vector<128xf32> to vector<1x128xf32>
    %237 = vector.broadcast %236 : vector<1x128xf32> to vector<16x128xf32>
    %238 = arith.subf %234, %237 : vector<16x128xf32>
    %239 = math.exp %238 : vector<16x128xf32>
    %cst_80 = arith.constant dense<0.000000e+00> : vector<128xf32>
    %240 = vector.multi_reduction <add>, %239, %cst_80 [0] : vector<16x128xf32> to vector<128xf32>
    %241 = vector.shape_cast %240 : vector<128xf32> to vector<1x128xf32>
    %242 = math.log %241 : vector<1x128xf32>
    %243 = arith.addf %236, %242 : vector<1x128xf32>
    %cst_81 = arith.constant 2.08208942 : f32
    %244 = vector.broadcast %cst_81 : f32 to vector<1x128xf32>
    %245 = arith.subf %243, %244 : vector<1x128xf32>
    %246 = math.exp %245 : vector<1x128xf32>
    %cst_82 = arith.constant 0.000000e+00 : f32
    %247 = vector.broadcast %cst_82 : f32 to vector<1x128xf32>
    %248 = arith.subf %247, %246 : vector<1x128xf32>
    %249 = arith.mulf %248, %245 : vector<1x128xf32>
    %cst_83 = arith.constant 0.000000e+00 : f32
    %250 = vector.broadcast %cst_83 : f32 to vector<1x128xf32>
    %251 = arith.select %13, %249, %250 : vector<1x128xi1>, vector<1x128xf32>
    %cst_84 = arith.constant dense<0.000000e+00> : vector<1xf32>
    %252 = vector.multi_reduction <add>, %251, %cst_84 [1] : vector<1x128xf32> to vector<1xf32>
    %253 = vector.shape_cast %252 : vector<1xf32> to vector<1x1xf32>
    %cst_85 = arith.constant -1.000000e+02 : f32
    %254 = vector.broadcast %cst_85 : f32 to vector<1x1xf32>
    %255 = arith.maximumf %254, %43 : vector<1x1xf32>
    %256 = arith.maximumf %255, %73 : vector<1x1xf32>
    %257 = arith.maximumf %256, %103 : vector<1x1xf32>
    %258 = arith.maximumf %257, %133 : vector<1x1xf32>
    %cst_86 = arith.constant -1.000000e+02 : f32
    %259 = vector.broadcast %cst_86 : f32 to vector<1x1xf32>
    %260 = arith.maximumf %259, %163 : vector<1x1xf32>
    %261 = arith.maximumf %260, %193 : vector<1x1xf32>
    %262 = arith.maximumf %261, %223 : vector<1x1xf32>
    %263 = arith.maximumf %262, %253 : vector<1x1xf32>
    %264 = arith.maximumf %258, %263 : vector<1x1xf32>
    %cst_87 = arith.constant 0.000000e+00 : f32
    %265 = vector.broadcast %cst_87 : f32 to vector<1x128xf32>
    %c0_i32 = arith.constant 0 : i32
    %266 = vector.broadcast %c0_i32 : i32 to vector<1x128xi32>
    %267 = arith.cmpi eq, %11, %266 : vector<1x128xi32>
    %268 = arith.divf %258, %264 : vector<1x1xf32>
    %269 = vector.shape_cast %268 : vector<1x1xf32> to vector<1x1xf32>
    %270 = vector.broadcast %269 : vector<1x1xf32> to vector<1x128xf32>
    %271 = arith.select %267, %270, %265 : vector<1x128xi1>, vector<1x128xf32>
    %c1_i32 = arith.constant 1 : i32
    %272 = vector.broadcast %c1_i32 : i32 to vector<1x128xi32>
    %273 = arith.cmpi eq, %11, %272 : vector<1x128xi32>
    %274 = arith.divf %263, %264 : vector<1x1xf32>
    %275 = vector.shape_cast %274 : vector<1x1xf32> to vector<1x1xf32>
    %276 = vector.broadcast %275 : vector<1x1xf32> to vector<1x128xf32>
    %277 = arith.select %273, %276, %271 : vector<1x128xi1>, vector<1x128xf32>
    %c0_88 = arith.constant 0 : index
    %c0_89 = arith.constant 0 : index
    %278 = vector.load %arg7[%c0_88, %c0_89] : memref<1x128xf32, #tpu.memory_space<vmem>>, vector<1x128xf32>
    tpu.vector_store %arg7[%c0_88, %c0_89], %277 {strides = array<i32>} : memref<1x128xf32, #tpu.memory_space<vmem>>, vector<1x128xf32>,
    return
  }
  func.func @transform_0(%arg0: i32) -> (i32, i32) {
    %c0_i32 = arith.constant 0 : i32
    %c0_i32_0 = arith.constant 0 : i32
    %c0_i32_1 = arith.constant 0 : i32
    return %c0_i32, %c0_i32_0 : i32, i32
  }
  func.func @transform_1(%arg0: i32) -> (i32, i32) {
    %c0_i32 = arith.constant 0 : i32
    %c0_i32_0 = arith.constant 0 : i32
    %c0_i32_1 = arith.constant 0 : i32
    return %c0_i32, %c0_i32_0 : i32, i32
  }
  func.func @transform_2(%arg0: i32) -> (i32, i32) {
    %c0_i32 = arith.constant 0 : i32
    %c0_i32_0 = arith.constant 0 : i32
    %c0_i32_1 = arith.constant 0 : i32
    return %c0_i32, %c0_i32_0 : i32, i32
  }
  func.func @transform_3(%arg0: i32) -> (i32, i32) {
    %c0_i32 = arith.constant 0 : i32
    %c0_i32_0 = arith.constant 0 : i32
    %c0_i32_1 = arith.constant 0 : i32
    return %c0_i32, %c0_i32_0 : i32, i32
  }
  func.func @transform_4(%arg0: i32) -> (i32, i32) {
    %c0_i32 = arith.constant 0 : i32
    %c0_i32_0 = arith.constant 0 : i32
    %c0_i32_1 = arith.constant 0 : i32
    return %c0_i32, %c0_i32_0 : i32, i32
  }
  func.func @transform_5(%arg0: i32) -> (i32, i32) {
    %c0_i32 = arith.constant 0 : i32
    %c0_i32_0 = arith.constant 0 : i32
    %c0_i32_1 = arith.constant 0 : i32
    return %c0_i32, %c0_i32_0 : i32, i32
  }
  func.func @transform_6(%arg0: i32) -> (i32, i32) {
    %c0_i32 = arith.constant 0 : i32
    %c0_i32_0 = arith.constant 0 : i32
    %c0_i32_1 = arith.constant 0 : i32
    return %c0_i32, %c0_i32_0 : i32, i32
  }
}

</mosaic_0001>

<bundles_post_ra>
// kernel: block_entropy_forward.1
= control target key start
LH: loop header
LB: loop body
LE: loop exit
PB: predicated region body
PF: predicated region fallthrough
CT: control target
= control target key end

     0   :  { %vm44_vm0 = vcmask 261120   ;;  %s1665_s0 = inlined_call_operand.vmem [shape: f32[128,32], index: 0, kind: input, shape index: {}]   ;;  %s1666_s1 = inlined_call_operand.vmem [shape: f32[128,64], index: 1, kind: input, shape index: {}]   ;;  %s1667_s2 = inlined_call_operand.vmem [shape: f32[16,128], index: 2, kind: input, shape index: {}]   ;;  %s1668_s3 = inlined_call_operand.vmem [shape: f32[1,128], index: 3, kind: input, shape index: {}]   ;;  %s1669_s4 = inlined_call_operand.vmem [shape: f32[32,128], index: 4, kind: input, shape index: {}]   ;;  %s1670_s5 = inlined_call_operand.vmem [shape: f32[128,64], index: 5, kind: input, shape index: {}]   ;;  %s1671_s6 = inlined_call_operand.hbm [shape: f32[1,128], index: 6, kind: output, shape index: {}]  }
   0x1   :  { %v43_v0 = vld [vmem:[%s1669_s4 + $0x18] sm:$0xff]  ;;  %v42_v1 = vld [vmem:[%s1669_s4 + $0x10] sm:$0xff]  ;;  %v24_v2 = vld [vmem:[%s1665_s0] sm:$0xff] }
   0x2   :  { %1065 = vmatprep.subr.mxu0 %v43_v0  ;;  %v41_v3 = vld [vmem:[%s1669_s4 + $0x8] sm:$0xff]  ;;  %1073 = vmatprep.mubr.msk.f32.mxu0 %vm44_vm0, %v24_v2  ;;  %v40_v4 = vld [vmem:[%s1669_s4] sm:$0xff]  ;;  %v253_v6 = vld [vmem:[%s1670_s5 + $0x78] sm:$0xff] }
   0x3   :  { %1066 = vmatpush3.msra.mxu0 %v43_v0  ;;  %v25_v5 = vld [vmem:[%s1665_s0 + $0x8] sm:$0xff]  ;;  %v26_v7 = vld [vmem:[%s1665_s0 + $0x10] sm:$0xff]  ;;  %1097 = vmatprep.subr.mxu1 %v253_v6  ;;  %v27_v10 = vld [vmem:[%s1665_s0 + $0x18] sm:$0xff] }
   0x4   :  { %1067 = vmatprep.subr.mxu0 %v42_v1  ;;  %v252_v8 = vld [vmem:[%s1670_s5 + $0x70] sm:$0xff]  ;;  %1098 = vmatpush3.msra.mxu1 %v253_v6  ;;  %v251_v9 = vld [vmem:[%s1670_s5 + $0x68] sm:$0xff]  ;;  %v250_v11 = vld [vmem:[%s1670_s5 + $0x60] sm:$0xff] }
   0x5   :  { %1068 = vmatpush3.msra.mxu0 %v42_v1  ;;  %1099 = vmatprep.subr.mxu1 %v252_v8  ;;  %v28_v12 = vld [vmem:[%s1665_s0 + $0x20] sm:$0xff] }
   0x6   :  { %1069 = vmatprep.subr.mxu0 %v41_v3  ;;  %1100 = vmatpush3.msra.mxu1 %v252_v8 }
   0x7   :  { %1070 = vmatpush3.msra.mxu0 %v41_v3  ;;  %1101 = vmatprep.subr.mxu1 %v251_v9 }
   0x8   :  { %1071 = vmatprep.subr.mxu0 %v40_v4 }
   0x9   :  { %1072 = vmatpush3.msra.mxu0 %v40_v4 }
   0xa   :  { %1074 = vmatmul.mubr.msk.f32.vlgmr.msra.gmra.mxu0 %vm44_vm0, %v25_v5 }
   0xb   :  { %1076 = vmatprep.mubr.msk.f32.mxu0 %vm44_vm0, %v26_v7 }
   0xc   :  { %11 = vsyncpa [#allocation3], 0  ;;  %1102 = vmatpush3.msra.mxu1 %v251_v9  ;;  %v249_v13 = vld [vmem:[%s1670_s5 + $0x58] sm:$0xff]  ;;  %v29_v14 = vld [vmem:[%s1665_s0 + $0x28] sm:$0xff]  ;;  %s1285_s25 = smov 96   ;;  %s1286_s26 = smov 88  }
   0xd   :  { %1103 = vmatprep.subr.mxu1 %v250_v11  ;;  %v248_v15 = vld [vmem:[%s1670_s5 + $0x50] sm:$0xff]  ;;  %v247_v17 = vld [vmem:[%s1670_s5 + $0x48] sm:$0xff]  ;;  %v31_v18 = vld [vmem:[%s1665_s0 + $0x38] sm:$0xff]  ;;  %s1287_s27 = smov 112   ;;  %s1288_s28 = smov 80   ;;  %vm528_vm1 = vcmask 64512  }
   0xe   :  { %1077 = vmatmul.mubr.msk.f32.gmra.mxu0 %vm44_vm0, %v27_v10  ;;  %1104 = vmatpush3.msra.mxu1 %v250_v11  ;;  %v30_v16 = vld [vmem:[%s1665_s0 + $0x30] sm:$0xff]  ;;  %v246_v19 = vld [vmem:[%s1670_s5 + $0x40] sm:$0xff]  ;;  %v245_v21 = vld [vmem:[%s1670_s5 + $0x38] sm:$0xff]  ;;  %s1289_s29 = smov 104  }
   0xf   :  { %1079 = vmatprep.mubr.msk.f32.mxu0 %vm44_vm0, %v28_v12  ;;  %1105 = vmatprep.subr.mxu1 %v249_v13  ;;  %v32_v20 = vld [vmem:[%s1665_s0 + $0x40] sm:$0xff]  ;;  %v33_v22 = vld [vmem:[%s1665_s0 + $0x48] sm:$0xff]  ;;  %v244_v23 = vld [vmem:[%s1670_s5 + $0x30] sm:$0xff] }
  0x10   :  { %1106 = vmatpush3.msra.mxu1 %v249_v13  ;;  %v34_v24 = vld [vmem:[%s1665_s0 + $0x50] sm:$0xff]  ;;  %v243_v25 = vld [vmem:[%s1670_s5 + $0x28] sm:$0xff]  ;;  %v35_v26 = vld [vmem:[%s1665_s0 + $0x58] sm:$0xff] }
  0x11   :  { %1107 = vmatprep.subr.mxu1 %v248_v15  ;;  %v242_v27 = vld [vmem:[%s1670_s5 + $0x20] sm:$0xff]  ;;  %v241_v29 = vld [vmem:[%s1670_s5 + $0x18] sm:$0xff]  ;;  %v37_v30 = vld [vmem:[%s1665_s0 + $0x68] sm:$0xff] }
  0x12   :  { %1080 = vmatmul.mubr.msk.f32.gmra.mxu0 %vm44_vm0, %v29_v14  ;;  %1108 = vmatpush3.msra.mxu1 %v248_v15  ;;  %v36_v28 = vld [vmem:[%s1665_s0 + $0x60] sm:$0xff]  ;;  %v240_v31 = vld [vmem:[%s1670_s5 + $0x10] sm:$0xff]  ;;  %v39_v33 = vld [vmem:[%s1665_s0 + $0x78] sm:$0xff] }
  0x13   :  { %1082 = vmatprep.mubr.msk.f32.mxu0 %vm44_vm0, %v30_v16  ;;  %1109 = vmatprep.subr.mxu1 %v247_v17  ;;  %v38_v32 = vld [vmem:[%s1665_s0 + $0x70] sm:$0xff]  ;;  %v239_v34 = vld [vmem:[%s1670_s5 + $0x8] sm:$0xff]  ;;  %v238_v35 = vld [vmem:[%s1670_s5] sm:$0xff] }
  0x14   :  { %1110 = vmatpush3.msra.mxu1 %v247_v17  ;;  %v447_v52 = vld [vmem:[%s1667_s2] sm:$0xff]  ;;  %v414_v3 = vld [vmem:[%s1666_s1 + $0x78] sm:$0xff]  ;;  %v412_v4 = vld [vmem:[%s1666_s1 + $0x68] sm:$0xff] }
  0x15   :  { %1111 = vmatprep.subr.mxu1 %v246_v19  ;;  %v413_v6 = vld [vmem:[%s1666_s1 + $0x70] sm:$0xff]  ;;  %v411_v8 = vld [vmem:[%s1666_s1 + $0x60] sm:$0xff]  ;;  %v410_v13 = vld [vmem:[%s1666_s1 + $0x58] sm:$0xff] }
  0x16   :  { %1083 = vmatmul.mubr.msk.f32.gmra.mxu0 %vm44_vm0, %v31_v18  ;;  %1112 = vmatpush3.msra.mxu1 %v246_v19  ;;  %v409_v16 = vld [vmem:[%s1666_s1 + $0x50] sm:$0xff]  ;;  %v408_v19 = vld [vmem:[%s1666_s1 + $0x48] sm:$0xff] }
  0x17   :  { %1085 = vmatprep.mubr.msk.f32.mxu0 %vm44_vm0, %v32_v20  ;;  %1113 = vmatprep.subr.mxu1 %v245_v21 }
  0x18   :  { %1114 = vmatpush3.msra.mxu1 %v245_v21 }
  0x19   :  { %1115 = vmatprep.subr.mxu1 %v244_v23 }
  0x1a   :  { %1086 = vmatmul.mubr.msk.f32.gmra.mxu0 %vm44_vm0, %v33_v22  ;;  %1116 = vmatpush3.msra.mxu1 %v244_v23  ;;  %v407_v22 = vld [vmem:[%s1666_s1 + $0x40] sm:$0xff] }
  0x1b   :  { %1088 = vmatprep.mubr.msk.f32.mxu0 %vm44_vm0, %v34_v24  ;;  %1117 = vmatprep.subr.mxu1 %v243_v25 }
  0x1c   :  { %1118 = vmatpush3.msra.mxu1 %v243_v25  ;;  %v406_v25 = vld [vmem:[%s1666_s1 + $0x38] sm:$0xff] }
  0x1d   :  { %1119 = vmatprep.subr.mxu1 %v242_v27 }
  0x1e   :  { %1089 = vmatmul.mubr.msk.f32.gmra.mxu0 %vm44_vm0, %v35_v26  ;;  %1120 = vmatpush3.msra.mxu1 %v242_v27 }
  0x1f   :  { %1091 = vmatprep.mubr.msk.f32.mxu0 %vm44_vm0, %v36_v28  ;;  %1121 = vmatprep.subr.mxu1 %v241_v29  ;;  %v405_v28 = vld [vmem:[%s1666_s1 + $0x30] sm:$0xff] }
  0x20   :  { %1122 = vmatpush3.msra.mxu1 %v241_v29 }
  0x21   :  { %1123 = vmatprep.subr.mxu1 %v240_v31 }
  0x22   :  { %1092 = vmatmul.mubr.msk.f32.gmra.mxu0 %vm44_vm0, %v37_v30  ;;  %1124 = vmatpush3.msra.mxu1 %v240_v31  ;;  %v404_v31 = vld [vmem:[%s1666_s1 + $0x28] sm:$0xff] }
  0x23   :  { %1094 = vmatprep.mubr.msk.f32.mxu0 %vm44_vm0, %v38_v32  ;;  %1125 = vmatprep.subr.mxu1 %v239_v34 }
  0x24   :  { %1126 = vmatpush3.msra.mxu1 %v239_v34  ;;  %v403_v34 = vld [vmem:[%s1666_s1 + $0x20] sm:$0xff] }
  0x25   :  { %1127 = vmatprep.subr.mxu1 %v238_v35 }
  0x26   :  { %1095 = vmatmul.mubr.msk.f32.gmra.mxu0 %vm44_vm0, %v39_v33  ;;  %1128 = vmatpush3.msra.mxu1 %v238_v35 }
  0x27   :  { %1185 = vmatprep.mubr.f32.mxu0 %v447_v52 }
  0xca   :  { %v1075_v36 = vpop.f32.mrf.mxu0 }
  0xcc   :  { %v159_v37 = vpop.f32.mrf.mxu0 }
  0xcd   :  { %1129 = vmatprep.mubr.f32.mxu1 %v159_v37  ;;  %v402_v37 = vld [vmem:[%s1666_s1 + $0x18] sm:$0xff] }
  0xce   :  { %v1078_v38 = vpop.f32.mrf.mxu0  ;;  %1130 = vmatmul.mubr.f32.vlgmr.msra.gmra.mxu1 %v1075_v36 }
  0xd0   :  { %v169_v39 = vpop.f32.mrf.mxu0 }
  0xd1   :  { %1132 = vmatprep.mubr.f32.mxu1 %v169_v39 }
  0xd2   :  { %v1081_v40 = vpop.f32.mrf.mxu0  ;;  %1133 = vmatmul.mubr.f32.gmra.mxu1 %v1078_v38 }
  0xd4   :  { %v179_v41 = vpop.f32.mrf.mxu0 }
  0xd5   :  { %1135 = vmatprep.mubr.f32.mxu1 %v179_v41 }
  0xd6   :  { %v1084_v42 = vpop.f32.mrf.mxu0  ;;  %1136 = vmatmul.mubr.f32.gmra.mxu1 %v1081_v40  ;;  %v401_v40 = vld [vmem:[%s1666_s1 + $0x10] sm:$0xff] }
  0xd8   :  { %v189_v43 = vpop.f32.mrf.mxu0 }
  0xd9   :  { %1138 = vmatprep.mubr.f32.mxu1 %v189_v43  ;;  %v400_v43 = vld [vmem:[%s1666_s1 + $0x8] sm:$0xff] }
  0xda   :  { %v1087_v44 = vpop.f32.mrf.mxu0  ;;  %1139 = vmatmul.mubr.f32.gmra.mxu1 %v1084_v42 }
  0xdc   :  { %v199_v45 = vpop.f32.mrf.mxu0 }
  0xdd   :  { %1141 = vmatprep.mubr.f32.mxu1 %v199_v45 }
  0xde   :  { %v1090_v46 = vpop.f32.mrf.mxu0  ;;  %1142 = vmatmul.mubr.f32.gmra.mxu1 %v1087_v44 }
  0xe0   :  { %v209_v47 = vpop.f32.mrf.mxu0 }
  0xe1   :  { %1144 = vmatprep.mubr.f32.mxu1 %v209_v47 }
  0xe2   :  { %v1093_v48 = vpop.f32.mrf.mxu0  ;;  %1145 = vmatmul.mubr.f32.gmra.mxu1 %v1090_v46  ;;  %v399_v46 = vld [vmem:[%s1666_s1] sm:$0xff]  ;;  %s1284_s1 = smov 120  }
  0xe4   :  { %v219_v49 = vpop.f32.mrf.mxu0 }
  0xe5   :  { %1147 = vmatprep.mubr.f32.mxu1 %v219_v49 }
  0xe6   :  { %v1096_v50 = vpop.f32.mrf.mxu0  ;;  %1148 = vmatmul.mubr.f32.gmra.mxu1 %v1093_v48 }
  0xe8   :  { %v229_v51 = vpop.f32.mrf.mxu0 }
  0xe9   :  { %1150 = vmatprep.mubr.f32.mxu1 %v229_v51 }
  0xea   :  { %1151 = vmatmul.mubr.f32.gmra.mxu1 %v1096_v50 }
 0x18e   :  { %v1454_v53 = vpop.f32.mrf.mxu1 }
 0x18f   :  { %v416_v47 = vsub.f32 %v1454_v53, %v400_v43 }
 0x190   :  { %v1456_v54 = vpop.f32.mrf.mxu1 }
 0x191   :  { %v415_v49 = vsub.f32 %v1456_v54, %v399_v46  ;;  %v432_v51 = vmul.f32 %v416_v47, %v416_v47 }
 0x192   :  { %v1458_v55 = vpop.f32.mrf.mxu1 }
 0x193   :  { %v418_v41 = vsub.f32 %v1458_v55, %v402_v37  ;;  %v431_v52 = vmul.f32 %v415_v49, %v415_v49  ;;  %v448_v55 = vld [vmem:[%s1667_s2 + $0x8] sm:$0xff]  ;;  %s1290_s2 = smov 72  }
 0x194   :  { %v1460_v56 = vpop.f32.mrf.mxu1 }
 0x195   :  { %v417_v44 = vsub.f32 %v1460_v56, %v401_v40  ;;  %v434_v48 = vmul.f32 %v418_v41, %v418_v41 }
 0x196   :  { %v1137_v57 = vpop.f32.mrf.mxu1 }
 0x197   :  { %v420_v35 = vsub.f32 %v1137_v57, %v404_v31  ;;  %v433_v50 = vmul.f32 %v417_v44, %v417_v44 }
 0x198   :  { %v340_v58 = vpop.f32.mrf.mxu1 }
 0x199   :  { %v419_v38 = vsub.f32 %v340_v58, %v403_v34  ;;  %v436_v42 = vmul.f32 %v420_v35, %v420_v35 }
 0x19a   :  { %v1140_v59 = vpop.f32.mrf.mxu1 }
 0x19b   :  { %v422_v29 = vsub.f32 %v1140_v59, %v406_v25  ;;  %v435_v45 = vmul.f32 %v419_v38, %v419_v38 }
 0x19c   :  { %v350_v60 = vpop.f32.mrf.mxu1 }
 0x19d   :  { %v421_v32 = vsub.f32 %v350_v60, %v405_v28  ;;  %v438_v36 = vmul.f32 %v422_v29, %v422_v29 }
 0x19e   :  { %v1143_v61 = vpop.f32.mrf.mxu1 }
 0x19f   :  { %v424_v23 = vsub.f32 %v1143_v61, %v408_v19  ;;  %v437_v39 = vmul.f32 %v421_v32, %v421_v32 }
 0x1a0   :  { %v360_v62 = vpop.f32.mrf.mxu1 }
 0x1a1   :  { %v423_v26 = vsub.f32 %v360_v62, %v407_v22  ;;  %v440_v30 = vmul.f32 %v424_v23, %v424_v23  ;;  %v1536_v23 = vld [vmem:[%s1668_s3] ss:$0 sm:$0xff]  ;;  %s1291_s3 = smov [#allocation2]  }
 0x1a2   :  { %v1146_v63 = vpop.f32.mrf.mxu1  ;;  %s962_s8 = sshll.u32 %s1291_s3, 4  ;;  %s963_s8 = int_to_ptr.vmem [resolvable:$true] %s962_s8 }
 0x1a3   :  { %v426_v17 = vsub.f32 %v1146_v63, %v410_v13  ;;  %v439_v33 = vmul.f32 %v423_v26, %v423_v26  ;;  %s1262_s9 = scalar_lea.vmem %s963_s8, 16  ;;  %s1266_s10 = scalar_lea.vmem %s963_s8, 32 }
 0x1a4   :  { %v370_v0 = vpop.f32.mrf.mxu1  ;;  %p1263_p0 = scmp.ne.s32.totalorder %s963_s8, %s1262_s9  ;;  %p1267_p1 = scmp.lt.s32.totalorder %s963_s8, %s963_s8 }
 0x1a5   :  { %v425_v20 = vsub.f32 %v370_v0, %v409_v16  ;;  %v442_v24 = vmul.f32 %v426_v17, %v426_v17  ;;  %p1268_p2 = scmp.lt.s32.totalorder %s1266_s10, %s1262_s9 }
 0x1a6   :  { %v1149_v1 = vpop.f32.mrf.mxu1 }
 0x1a7   :  { %v428_v10 = vsub.f32 %v1149_v1, %v412_v4  ;;  %v441_v27 = vmul.f32 %v425_v20, %v425_v20  ;;  %p1269_p3 = por %p1268_p2, %p1267_p1 }
 0x1a8   :  { %v380_v2 = vpop.f32.mrf.mxu1 }
 0x1a9   :  { %v427_v14 = vsub.f32 %v380_v2, %v411_v8  ;;  %v444_v18 = vmul.f32 %v428_v10, %v428_v10  ;;  %p1270_p4 = pnand %p1269_p3, %p1263_p0 }
 0x1aa   :  { %v1152_v5 = vpop.f32.mrf.mxu1 }
 0x1ab   :  { %v430_v7 = vsub.f32 %v1152_v5, %v414_v3  ;;  %v443_v21 = vmul.f32 %v427_v14, %v427_v14 }
 0x1ac   :  { %v390_v9 = vpop.f32.mrf.mxu1 }
 0x1ad   :  { %v446_v11 = vmul.f32 %v430_v7, %v430_v7  ;;  %v429_v12 = vsub.f32 %v390_v9, %v413_v6 }
 0x1af   :  { %v445_v15 = vmul.f32 %v429_v12, %v429_v12  ;;  %1153 = vmatprep.subr.mxu0 %v446_v11 }
 0x1b0   :  { %1154 = vmatpush3.msra.mxu0 %v446_v11 }
 0x1b1   :  { %1155 = vmatprep.subr.mxu0 %v445_v15 }
 0x1b2   :  { %1156 = vmatpush3.msra.mxu0 %v445_v15 }
 0x1b3   :  { %1157 = vmatprep.subr.mxu0 %v444_v18 }
 0x1b4   :  { %1158 = vmatpush3.msra.mxu0 %v444_v18 }
 0x1b5   :  { %1159 = vmatprep.subr.mxu0 %v443_v21 }
 0x1b6   :  { %1160 = vmatpush3.msra.mxu0 %v443_v21 }
 0x1b7   :  { %1161 = vmatprep.subr.mxu0 %v442_v24 }
 0x1b8   :  { %1162 = vmatpush3.msra.mxu0 %v442_v24 }
 0x1b9   :  { %1163 = vmatprep.subr.mxu0 %v441_v27 }
 0x1ba   :  { %1164 = vmatpush3.msra.mxu0 %v441_v27 }
 0x1bb   :  { %1165 = vmatprep.subr.mxu0 %v440_v30 }
 0x1bc   :  { %1166 = vmatpush3.msra.mxu0 %v440_v30 }
 0x1bd   :  { %1167 = vmatprep.subr.mxu0 %v439_v33 }
 0x1be   :  { %1168 = vmatpush3.msra.mxu0 %v439_v33 }
 0x1bf   :  { %1169 = vmatprep.subr.mxu0 %v438_v36 }
 0x1c0   :  { %1170 = vmatpush3.msra.mxu0 %v438_v36 }
 0x1c1   :  { %1171 = vmatprep.subr.mxu0 %v437_v39 }
 0x1c2   :  { %1172 = vmatpush3.msra.mxu0 %v437_v39 }
 0x1c3   :  { %1173 = vmatprep.subr.mxu0 %v436_v42 }
 0x1c4   :  { %1174 = vmatpush3.msra.mxu0 %v436_v42 }
 0x1c5   :  { %1175 = vmatprep.subr.mxu0 %v435_v45 }
 0x1c6   :  { %1176 = vmatpush3.msra.mxu0 %v435_v45 }
 0x1c7   :  { %1177 = vmatprep.subr.mxu0 %v434_v48 }
 0x1c8   :  { %1178 = vmatpush3.msra.mxu0 %v434_v48 }
 0x1c9   :  { %1179 = vmatprep.subr.mxu0 %v433_v50 }
 0x1ca   :  { %1180 = vmatpush3.msra.mxu0 %v433_v50 }
 0x1cb   :  { %1181 = vmatprep.subr.mxu0 %v432_v51 }
 0x1cc   :  { %1182 = vmatpush3.msra.mxu0 %v432_v51 }
 0x1cd   :  { %1183 = vmatprep.subr.mxu0 %v431_v52 }
 0x1ce   :  { %1184 = vmatpush3.msra.mxu0 %v431_v52 }
 0x1cf   :  { %1186 = vmatmul.mubr.f32.vlgmr.msra.gmra.mxu0 %v448_v55 }
 0x28f   :  { %v1187_v53 = vpop.f32.mrf.mxu0 }
 0x290   :  { %584 = vrot.lane.b32.xlu1 %v1187_v53, %s1284_s1  ;;  %737 = vrot.lane.b32.xlu0 %v1187_v53, %s1285_s25  ;;  %v532_v57 = vsel %vm528_vm1, %v1187_v53, 0.0 }
 0x291   :  { %v515_v54 = vpop.f32.mrf.mxu0 }
 0x292   :  { %v529_v56 = vsel %vm528_vm1, %v515_v54, 0.0 }
 0x294   :  { %788 = vrot.lane.b32.xlu1 %v1187_v53, %s1286_s26  ;;  %735 = vrot.lane.b32.xlu0 %v515_v54, %s1285_s25 }
 0x298   :  { %635 = vrot.lane.b32.xlu1 %v1187_v53, %s1287_s27  ;;  %786 = vrot.lane.b32.xlu0 %v515_v54, %s1286_s26 }
 0x29c   :  { %839 = vrot.lane.b32.xlu1 %v1187_v53, %s1288_s28  ;;  %633 = vrot.lane.b32.xlu0 %v515_v54, %s1287_s27 }
 0x2a0   :  { %686 = vrot.lane.b32.xlu1 %v1187_v53, %s1289_s29  ;;  %837 = vrot.lane.b32.xlu0 %v515_v54, %s1288_s28 }
 0x2a4   :  { %582 = vrot.lane.b32.xlu1 %v515_v54, %s1284_s1  ;;  %684 = vrot.lane.b32.xlu0 %v515_v54, %s1289_s29 }
 0x2a8   :  { %890 = vrot.lane.b32.xlu1 %v1187_v53, %s1290_s2  ;;  %888 = vrot.lane.b32.xlu0 %v515_v54, %s1290_s2 }
 0x2c7   :  { %530 = vadd.xlane.f32.xlu0 %v529_v56 }
 0x2cc   :  { %533 = vadd.xlane.f32.xlu1 %v532_v57 }
 0x302   :  { %v585_v58 = vpop.permute.xlu1 %584  ;;  %v738_v59 = vpop.permute.xlu0 %737 }
 0x303   :  { %v744_v60 = vsel %vm528_vm1, %v738_v59, 0.0  ;;  %v591_v62 = vsel %vm528_vm1, %v585_v58, 0.0 }
 0x304   :  { %745 = vadd.xlane.f32.xlu0 %v744_v60 }
 0x306   :  { %v789_v61 = vpop.permute.xlu1 %788  ;;  %v736_v63 = vpop.permute.xlu0 %735 }
 0x307   :  { %v795_v1 = vsel %vm528_vm1, %v789_v61, 0.0  ;;  %v741_v10 = vsel %vm528_vm1, %v736_v63, 0.0 }
 0x308   :  { %592 = vadd.xlane.f32.xlu0 %v591_v62 }
 0x30a   :  { %v636_v0 = vpop.permute.xlu1 %635  ;;  %v787_v4 = vpop.permute.xlu0 %786 }
 0x30b   :  { %v642_v3 = vsel %vm528_vm1, %v636_v0, 0.0  ;;  %v792_v11 = vsel %vm528_vm1, %v787_v4, 0.0 }
 0x30c   :  { %796 = vadd.xlane.f32.xlu0 %v795_v1 }
 0x30e   :  { %v840_v2 = vpop.permute.xlu1 %839  ;;  %v634_v7 = vpop.permute.xlu0 %633 }
 0x30f   :  { %v846_v6 = vsel %vm528_vm1, %v840_v2, 0.0  ;;  %v639_v15 = vsel %vm528_vm1, %v634_v7, 0.0 }
 0x310   :  { %643 = vadd.xlane.f32.xlu0 %v642_v3 }
 0x312   :  { %v687_v5 = vpop.permute.xlu1 %686  ;;  %v838_v13 = vpop.permute.xlu0 %837 }
 0x313   :  { %v693_v12 = vsel %vm528_vm1, %v687_v5, 0.0  ;;  %v843_v18 = vsel %vm528_vm1, %v838_v13, 0.0 }
 0x314   :  { %847 = vadd.xlane.f32.xlu0 %v846_v6 }
 0x316   :  { %v583_v8 = vpop.permute.xlu1 %582  ;;  %v685_v17 = vpop.permute.xlu0 %684 }
 0x317   :  { %v588_v9 = vsel %vm528_vm1, %v583_v8, 0.0  ;;  %v690_v19 = vsel %vm528_vm1, %v685_v17, 0.0 }
 0x318   :  { %589 = vadd.xlane.f32.xlu1 %v588_v9  ;;  %742 = vadd.xlane.f32.xlu0 %v741_v10 }
 0x31a   :  { %v891_v14 = vpop.permute.xlu1 %890  ;;  %v889_v20 = vpop.permute.xlu0 %888 }
 0x31b   :  { %v897_v16 = vsel %vm528_vm1, %v891_v14, 0.0  ;;  %v894_v21 = vsel %vm528_vm1, %v889_v20, 0.0 }
 0x31c   :  { %793 = vadd.xlane.f32.xlu1 %v792_v11  ;;  %694 = vadd.xlane.f32.xlu0 %v693_v12 }
 0x320   :  { %640 = vadd.xlane.f32.xlu1 %v639_v15  ;;  %898 = vadd.xlane.f32.xlu0 %v897_v16 }
 0x324   :  { %844 = vadd.xlane.f32.xlu1 %v843_v18 }
 0x328   :  { %691 = vadd.xlane.f32.xlu1 %v690_v19 }
 0x32c   :  { %895 = vadd.xlane.f32.xlu1 %v894_v21 }
 0x350   :  { %v531_v22 = vpop.xlane.xlu0 %530 }
 0x351   :  { %v535_v24 = vmul.f32 0.015625, %v531_v22 }
 0x353   :  { %v543_v25 = vsub.f32 %v535_v24, %v1536_v23  ;;  %v525_v24 = vlaneseq }
 0x355   :  { %v534_v26 = vpop.xlane.xlu1 %533  ;;  %v545_v28 = vmul.f32 %v543_v25, %v543_v25 }
 0x356   :  { %v536_v27 = vmul.f32 0.015625, %v534_v26 }
 0x357   :  { %v547_v31 = vmul.f32 -12.5, %v545_v28 }
 0x358   :  { %v544_v29 = vsub.f32 %v536_v27, %v1536_v23 }
 0x35a   :  { %v546_v30 = vmul.f32 %v544_v29, %v544_v29 }
 0x35c   :  { %v548_v32 = vmul.f32 -12.5, %v546_v30 }
 0x35e   :  { %v549_v33 = vmax.f32 %v547_v31, %v548_v32 }
 0x360   :  { %v550_v34 = vrot.slane %v549_v33, 4 }
 0x362   :  { %v551_v35 = vmax.f32 %v549_v33, %v550_v34 }
 0x364   :  { %v552_v36 = vrot.slane %v551_v35, 2 }
 0x366   :  { %v553_v37 = vmax.f32 %v551_v35, %v552_v36 }
 0x368   :  { %v554_v38 = vrot.slane %v553_v37, 1 }
 0x36a   :  { %v555_v39 = vmax.f32 %v553_v37, %v554_v38  ;;  %v1563_v37 = vand.u32 127, %v525_v24 }
 0x36c   :  { %v556_v40 = vsub.f32 %v547_v31, %v555_v39  ;;  %v557_v41 = vsub.f32 %v548_v32, %v555_v39  ;;  %vm527_vm2 = vcmp.lt.s32.totalorder %v1563_v37, 100  ;;  %vm948_vm3 = vcmp.eq.s32.totalorder %v1563_v37, 0 }
 0x36d   :  { %vm952_vm4 = vcmp.eq.s32.totalorder %v1563_v37, 1 }
 0x36e   :  { %v558_v42 = vmul.f32 1.442695, %v556_v40  ;;  %v560_v43 = vmul.f32 1.442695, %v557_v41 }
 0x370   :  { %1196 = vpow2.f32 %v558_v42 }
 0x371   :  { %1198 = vpow2.f32 %v560_v43 }
 0x37d   :  { %v1197_v44 = vpop.eup %1196 }
 0x37e   :  { %v1199_v45 = vpop.eup %1198 }
 0x37f   :  { %v562_v46 = vadd.f32 %v1199_v45, %v1197_v44 }
 0x381   :  { %v563_v47 = vrot.slane %v562_v46, 4 }
 0x383   :  { %v564_v48 = vadd.f32 %v563_v47, %v562_v46 }
 0x385   :  { %v565_v49 = vrot.slane %v564_v48, 2 }
 0x387   :  { %v566_v50 = vadd.f32 %v565_v49, %v564_v48 }
 0x389   :  { %v567_v51 = vrot.slane %v566_v50, 1 }
 0x38b   :  { %v568_v52 = vadd.f32 %v567_v51, %v566_v50 }
 0x38d   :  { %v746_v55 = vpop.xlane.xlu0 %745  ;;  %1200 = vlog2.f32 %v568_v52 }
 0x38e   :  { %v748_v58 = vmul.f32 0.015625, %v746_v55 }
 0x390   :  { %v750_v63 = vsub.f32 %v748_v58, %v1536_v23 }
 0x391   :  { %v593_v53 = vpop.xlane.xlu0 %592 }
 0x392   :  { %v595_v59 = vmul.f32 0.015625, %v593_v53  ;;  %v752_v8 = vmul.f32 %v750_v63, %v750_v63 }
 0x394   :  { %v597_v0 = vsub.f32 %v595_v59, %v1536_v23  ;;  %v1548_v20 = vmul.f32 -12.5, %v752_v8 }
 0x395   :  { %v797_v54 = vpop.xlane.xlu0 %796 }
 0x396   :  { %v799_v2 = vmul.f32 0.015625, %v797_v54  ;;  %v599_v9 = vmul.f32 %v597_v0, %v597_v0 }
 0x398   :  { %v801_v11 = vsub.f32 %v799_v2, %v1536_v23  ;;  %v1550_v21 = vmul.f32 -12.5, %v599_v9 }
 0x399   :  { %v644_v56 = vpop.xlane.xlu0 %643 }
 0x39a   :  { %v1201_v57 = vpop.eup %1200  ;;  %v646_v10 = vmul.f32 0.015625, %v644_v56  ;;  %v803_v25 = vmul.f32 %v801_v11, %v801_v11 }
 0x39b   :  { %v570_v60 = vmul.f32 0.6931472, %v1201_v57 }
 0x39c   :  { %v648_v22 = vsub.f32 %v646_v10, %v1536_v23  ;;  %v1565_v38 = vmul.f32 -12.5, %v803_v25 }
 0x39d   :  { %v848_v61 = vpop.xlane.xlu0 %847  ;;  %v571_v62 = vadd.f32 %v570_v60, %v555_v39 }
 0x39e   :  { %v850_v14 = vmul.f32 0.015625, %v848_v61  ;;  %v650_v35 = vmul.f32 %v648_v22, %v648_v22 }
 0x39f   :  { %v1542_v1 = vadd.f32 -2.0820894, %v571_v62 }
 0x3a0   :  { %v852_v29 = vsub.f32 %v850_v14, %v1536_v23  ;;  %v1573_v51 = vmul.f32 -12.5, %v650_v35 }
 0x3a1   :  { %v590_v3 = vpop.xlane.xlu1 %589  ;;  %v743_v4 = vpop.xlane.xlu0 %742  ;;  %v573_v5 = vmul.f32 1.442695, %v1542_v1 }
 0x3a2   :  { %v594_v6 = vmul.f32 0.015625, %v590_v3  ;;  %v747_v7 = vmul.f32 0.015625, %v743_v4  ;;  %v854_v43 = vmul.f32 %v852_v29, %v852_v29 }
 0x3a3   :  { %1202 = vpow2.f32 %v573_v5 }
 0x3a4   :  { %v596_v12 = vsub.f32 %v594_v6, %v1536_v23  ;;  %v749_v13 = vsub.f32 %v747_v7, %v1536_v23  ;;  %v1577_v59 = vmul.f32 -12.5, %v854_v43 }
 0x3a5   :  { %v794_v15 = vpop.xlane.xlu1 %793  ;;  %v695_v19 = vpop.xlane.xlu0 %694 }
 0x3a6   :  { %v598_v16 = vmul.f32 %v596_v12, %v596_v12  ;;  %v751_v17 = vmul.f32 %v749_v13, %v749_v13  ;;  %v798_v18 = vmul.f32 0.015625, %v794_v15  ;;  %v697_v30 = vmul.f32 0.015625, %v695_v19 }
 0x3a8   :  { %v1553_v26 = vmul.f32 -12.5, %v598_v16  ;;  %v1555_v27 = vmul.f32 -12.5, %v751_v17  ;;  %v800_v28 = vsub.f32 %v798_v18, %v1536_v23  ;;  %v699_v44 = vsub.f32 %v697_v30, %v1536_v23 }
 0x3a9   :  { %v641_v31 = vpop.xlane.xlu1 %640  ;;  %v899_v42 = vpop.xlane.xlu0 %898 }
 0x3aa   :  { %v602_v32 = vmax.f32 %v1553_v26, %v1550_v21  ;;  %v755_v33 = vmax.f32 %v1555_v27, %v1548_v20  ;;  %v802_v34 = vmul.f32 %v800_v28, %v800_v28  ;;  %v645_v36 = vmul.f32 0.015625, %v641_v31 }
 0x3ab   :  { %v901_v55 = vmul.f32 0.015625, %v899_v42  ;;  %v701_v60 = vmul.f32 %v699_v44, %v699_v44 }
 0x3ac   :  { %v603_v39 = vrot.slane %v602_v32, 4  ;;  %v756_v40 = vrot.slane %v755_v33, 4  ;;  %v1567_v41 = vmul.f32 -12.5, %v802_v34  ;;  %v647_v45 = vsub.f32 %v645_v36, %v1536_v23 }
 0x3ad   :  { %v845_v46 = vpop.xlane.xlu1 %844  ;;  %v903_v6 = vsub.f32 %v901_v55, %v1536_v23  ;;  %v1587_v13 = vmul.f32 -12.5, %v701_v60 }
 0x3ae   :  { %v604_v47 = vmax.f32 %v602_v32, %v603_v39  ;;  %v757_v48 = vmax.f32 %v755_v33, %v756_v40  ;;  %v806_v49 = vmax.f32 %v1567_v41, %v1565_v38  ;;  %v849_v50 = vmul.f32 0.015625, %v845_v46 }
 0x3af   :  { %v649_v52 = vmul.f32 %v647_v45, %v647_v45  ;;  %v905_v25 = vmul.f32 %v903_v6, %v903_v6 }
 0x3b0   :  { %v1203_v53 = vpop.eup %1202  ;;  %v605_v54 = vrot.slane %v604_v47, 2  ;;  %v758_v56 = vrot.slane %v757_v48, 2  ;;  %v807_v57 = vrot.slane %v806_v49, 4  ;;  %v851_v58 = vsub.f32 %v849_v50, %v1536_v23 }
 0x3b1   :  { %v1579_v61 = vmul.f32 -12.5, %v649_v52  ;;  %v692_v62 = vpop.xlane.xlu1 %691  ;;  %v575_v63 = vsub.f32 0.0, %v1203_v53 }
 0x3b2   :  { %v606_v0 = vmax.f32 %v604_v47, %v605_v54  ;;  %v759_v2 = vmax.f32 %v757_v48, %v758_v56  ;;  %v808_v3 = vmax.f32 %v806_v49, %v807_v57  ;;  %v853_v4 = vmul.f32 %v851_v58, %v851_v58 }
 0x3b3   :  { %v653_v5 = vmax.f32 %v1579_v61, %v1573_v51  ;;  %v696_v7 = vmul.f32 0.015625, %v692_v62  ;;  %v576_v8 = vmul.f32 %v1542_v1, %v575_v63  ;;  %v1609_v47 = vmul.f32 -12.5, %v905_v25 }
 0x3b4   :  { %v607_v9 = vrot.slane %v606_v0, 1  ;;  %v760_v10 = vrot.slane %v759_v2, 1  ;;  %v809_v11 = vrot.slane %v808_v3, 2  ;;  %v1585_v12 = vmul.f32 -12.5, %v853_v4 }
 0x3b5   :  { %v654_v14 = vrot.slane %v653_v5, 4  ;;  %v698_v15 = vsub.f32 %v696_v7, %v1536_v23  ;;  %v896_v16 = vpop.xlane.xlu1 %895  ;;  %v577_v17 = vsel %vm527_vm2, %v576_v8, 0.0 }
 0x3b6   :  { %v1592_v18 = vmax.f32 %v606_v0, %v607_v9  ;;  %v1594_v19 = vmax.f32 %v759_v2, %v760_v10  ;;  %v810_v22 = vmax.f32 %v808_v3, %v809_v11  ;;  %v857_v1 = vmax.f32 %v1585_v12, %v1577_v59  ;;  %578 = vadd.xlane.f32.xlu1 %v577_v17 }
 0x3b7   :  { %v655_v24 = vmax.f32 %v653_v5, %v654_v14  ;;  %v700_v28 = vmul.f32 %v698_v15, %v698_v15  ;;  %v900_v29 = vmul.f32 0.015625, %v896_v16 }
 0x3b8   :  { %v609_v30 = vsub.f32 %v1553_v26, %v1592_v18  ;;  %v610_v31 = vsub.f32 %v1550_v21, %v1592_v18  ;;  %v762_v32 = vsub.f32 %v1555_v27, %v1594_v19  ;;  %v763_v33 = vsub.f32 %v1548_v20, %v1594_v19 }
 0x3b9   :  { %v811_v34 = vrot.slane %v810_v22, 1  ;;  %v656_v35 = vrot.slane %v655_v24, 2  ;;  %v858_v36 = vrot.slane %v857_v1, 4  ;;  %v702_v39 = vmul.f32 -12.5, %v700_v28 }
 0x3ba   :  { %v611_v40 = vmul.f32 1.442695, %v609_v30  ;;  %v613_v42 = vmul.f32 1.442695, %v610_v31  ;;  %v764_v43 = vmul.f32 1.442695, %v762_v32  ;;  %v902_v44 = vsub.f32 %v900_v29, %v1536_v23 }
 0x3bb   :  { %v766_v45 = vmul.f32 1.442695, %v763_v33  ;;  %v1607_v26 = vmax.f32 %v810_v22, %v811_v34  ;;  %v657_v46 = vmax.f32 %v655_v24, %v656_v35  ;;  %v859_v21 = vmax.f32 %v857_v1, %v858_v36 }
 0x3bc   :  { %1204 = vpow2.f32 %v611_v40  ;;  %v704_v27 = vmax.f32 %v702_v39, %v1587_v13  ;;  %v904_v20 = vmul.f32 %v902_v44, %v902_v44 }
 0x3bd   :  { %1206 = vpow2.f32 %v613_v42  ;;  %v813_v48 = vsub.f32 %v1567_v41, %v1607_v26  ;;  %v814_v49 = vsub.f32 %v1565_v38, %v1607_v26  ;;  %v658_v50 = vrot.slane %v657_v46, 1 }
 0x3be   :  { %1208 = vpow2.f32 %v764_v43  ;;  %v860_v23 = vrot.slane %v859_v21, 2  ;;  %v705_v52 = vrot.slane %v704_v27, 4  ;;  %v906_v55 = vmul.f32 -12.5, %v904_v20 }
 0x3bf   :  { %1210 = vpow2.f32 %v766_v45  ;;  %v815_v53 = vmul.f32 1.442695, %v813_v48  ;;  %v817_v54 = vmul.f32 1.442695, %v814_v49  ;;  %v1616_v56 = vmax.f32 %v657_v46, %v658_v50 }
 0x3c0   :  { %v861_v57 = vmax.f32 %v859_v21, %v860_v23  ;;  %v706_v58 = vmax.f32 %v704_v27, %v705_v52  ;;  %v908_v60 = vmax.f32 %v906_v55, %v1609_v47 }
 0x3c1   :  { %1212 = vpow2.f32 %v815_v53  ;;  %v660_v41 = vsub.f32 %v1579_v61, %v1616_v56  ;;  %v661_v38 = vsub.f32 %v1573_v51, %v1616_v56 }
 0x3c2   :  { %1214 = vpow2.f32 %v817_v54  ;;  %v862_v62 = vrot.slane %v861_v57, 1  ;;  %v707_v63 = vrot.slane %v706_v58, 2  ;;  %v909_v0 = vrot.slane %v908_v60, 4 }
 0x3c3   :  { %v662_v2 = vmul.f32 1.442695, %v660_v41  ;;  %v664_v3 = vmul.f32 1.442695, %v661_v38 }
 0x3c4   :  { %v1623_v4 = vmax.f32 %v861_v57, %v862_v62  ;;  %v708_v5 = vmax.f32 %v706_v58, %v707_v63  ;;  %v910_v6 = vmax.f32 %v908_v60, %v909_v0 }
 0x3c5   :  { %1216 = vpow2.f32 %v662_v2 }
 0x3c6   :  { %1218 = vpow2.f32 %v664_v3  ;;  %v864_v7 = vsub.f32 %v1585_v12, %v1623_v4  ;;  %v865_v61 = vsub.f32 %v1577_v59, %v1623_v4  ;;  %v709_v8 = vrot.slane %v708_v5, 1 }
 0x3c7   :  { %v911_v51 = vrot.slane %v910_v6, 2 }
 0x3c8   :  { %v866_v9 = vmul.f32 1.442695, %v864_v7  ;;  %v868_v10 = vmul.f32 1.442695, %v865_v61  ;;  %v1629_v11 = vmax.f32 %v708_v5, %v709_v8 }
 0x3c9   :  { %v1205_v14 = vpop.eup %1204  ;;  %v912_v15 = vmax.f32 %v910_v6, %v911_v51 }
 0x3ca   :  { %v1207_v16 = vpop.eup %1206  ;;  %1220 = vpow2.f32 %v866_v9  ;;  %v711_v17 = vsub.f32 %v702_v39, %v1629_v11  ;;  %v712_v22 = vsub.f32 %v1587_v13, %v1629_v11 }
 0x3cb   :  { %v1209_v1 = vpop.eup %1208  ;;  %1222 = vpow2.f32 %v868_v10  ;;  %v913_v12 = vrot.slane %v912_v15, 1  ;;  %v615_v24 = vadd.f32 %v1207_v16, %v1205_v14 }
 0x3cc   :  { %v1211_v59 = vpop.eup %1210  ;;  %v713_v25 = vmul.f32 1.442695, %v711_v17  ;;  %v715_v28 = vmul.f32 1.442695, %v712_v22 }
 0x3cd   :  { %v1634_v29 = vmax.f32 %v912_v15, %v913_v12  ;;  %v616_v30 = vrot.slane %v615_v24, 4  ;;  %v768_v31 = vadd.f32 %v1211_v59, %v1209_v1 }
 0x3ce   :  { %v1213_v32 = vpop.eup %1212  ;;  %1224 = vpow2.f32 %v713_v25 }
 0x3cf   :  { %v1215_v33 = vpop.eup %1214  ;;  %1226 = vpow2.f32 %v715_v28  ;;  %v915_v34 = vsub.f32 %v906_v55, %v1634_v29  ;;  %v916_v13 = vsub.f32 %v1609_v47, %v1634_v29  ;;  %v617_v35 = vadd.f32 %v616_v30, %v615_v24 }
 0x3d0   :  { %v769_v36 = vrot.slane %v768_v31, 4  ;;  %v819_v39 = vadd.f32 %v1215_v33, %v1213_v32 }
 0x3d1   :  { %v917_v40 = vmul.f32 1.442695, %v915_v34  ;;  %v919_v42 = vmul.f32 1.442695, %v916_v13  ;;  %v618_v43 = vrot.slane %v617_v35, 2 }
 0x3d2   :  { %v1217_v44 = vpop.eup %1216  ;;  %v770_v45 = vadd.f32 %v769_v36, %v768_v31  ;;  %v820_v46 = vrot.slane %v819_v39, 4 }
 0x3d3   :  { %v1219_v21 = vpop.eup %1218  ;;  %1228 = vpow2.f32 %v917_v40  ;;  %v619_v27 = vadd.f32 %v618_v43, %v617_v35 }
 0x3d4   :  { %1230 = vpow2.f32 %v919_v42  ;;  %v666_v20 = vadd.f32 %v1219_v21, %v1217_v44  ;;  %v771_v48 = vrot.slane %v770_v45, 2  ;;  %v821_v49 = vadd.f32 %v820_v46, %v819_v39 }
 0x3d5   :  { %v620_v50 = vrot.slane %v619_v27, 1 }
 0x3d6   :  { %v667_v23 = vrot.slane %v666_v20, 4  ;;  %v772_v52 = vadd.f32 %v771_v48, %v770_v45  ;;  %v822_v47 = vrot.slane %v821_v49, 2 }
 0x3d7   :  { %v1221_v55 = vpop.eup %1220  ;;  %v621_v53 = vadd.f32 %v620_v50, %v619_v27 }
 0x3d8   :  { %v1223_v54 = vpop.eup %1222  ;;  %v668_v57 = vadd.f32 %v667_v23, %v666_v20  ;;  %v773_v58 = vrot.slane %v772_v52, 1  ;;  %v823_v60 = vadd.f32 %v822_v47, %v821_v49 }
 0x3d9   :  { %1232 = vlog2.f32 %v621_v53  ;;  %v870_v41 = vadd.f32 %v1223_v54, %v1221_v55 }
 0x3da   :  { %v669_v38 = vrot.slane %v668_v57, 2  ;;  %v774_v62 = vadd.f32 %v773_v58, %v772_v52  ;;  %v824_v63 = vrot.slane %v823_v60, 1 }
 0x3db   :  { %v1225_v0 = vpop.eup %1224  ;;  %v871_v2 = vrot.slane %v870_v41, 4 }
 0x3dc   :  { %v1227_v3 = vpop.eup %1226  ;;  %v670_v5 = vadd.f32 %v669_v38, %v668_v57  ;;  %1234 = vlog2.f32 %v774_v62  ;;  %v825_v6 = vadd.f32 %v824_v63, %v823_v60 }
 0x3dd   :  { %v872_v7 = vadd.f32 %v871_v2, %v870_v41  ;;  %v717_v61 = vadd.f32 %v1227_v3, %v1225_v0 }
 0x3de   :  { %v671_v8 = vrot.slane %v670_v5, 1  ;;  %1236 = vlog2.f32 %v825_v6 }
 0x3df   :  { %v873_v51 = vrot.slane %v872_v7, 2  ;;  %v718_v9 = vrot.slane %v717_v61, 4 }
 0x3e0   :  { %v1229_v10 = vpop.eup %1228  ;;  %v672_v14 = vadd.f32 %v671_v8, %v670_v5 }
 0x3e1   :  { %v1231_v15 = vpop.eup %1230  ;;  %v874_v16 = vadd.f32 %v873_v51, %v872_v7  ;;  %v719_v17 = vadd.f32 %v718_v9, %v717_v61 }
 0x3e2   :  { %1238 = vlog2.f32 %v672_v14  ;;  %v921_v22 = vadd.f32 %v1231_v15, %v1229_v10 }
 0x3e3   :  { %v875_v1 = vrot.slane %v874_v16, 1  ;;  %v720_v12 = vrot.slane %v719_v17, 2 }
 0x3e4   :  { %v922_v24 = vrot.slane %v921_v22, 4 }
 0x3e5   :  { %v876_v59 = vadd.f32 %v875_v1, %v874_v16  ;;  %v721_v25 = vadd.f32 %v720_v12, %v719_v17 }
 0x3e6   :  { %v1233_v28 = vpop.eup %1232  ;;  %v923_v30 = vadd.f32 %v922_v24, %v921_v22 }
 0x3e7   :  { %v623_v31 = vmul.f32 0.6931472, %v1233_v28  ;;  %1240 = vlog2.f32 %v876_v59  ;;  %v722_v32 = vrot.slane %v721_v25, 1 }
 0x3e8   :  { %v924_v33 = vrot.slane %v923_v30, 2 }
 0x3e9   :  { %v1235_v34 = vpop.eup %1234  ;;  %v624_v13 = vadd.f32 %v623_v31, %v1592_v18  ;;  %v723_v35 = vadd.f32 %v722_v32, %v721_v25 }
 0x3ea   :  { %v776_v36 = vmul.f32 0.6931472, %v1235_v34  ;;  %v925_v39 = vadd.f32 %v924_v33, %v923_v30 }
 0x3eb   :  { %v988_v40 = vadd.f32 -2.0820894, %v624_v13  ;;  %1242 = vlog2.f32 %v723_v35  ;;  %v1237_v42 = vpop.eup %1236 }
 0x3ec   :  { %v777_v43 = vadd.f32 %v776_v36, %v1594_v19  ;;  %v926_v44 = vrot.slane %v925_v39, 1  ;;  %v827_v20 = vmul.f32 0.6931472, %v1237_v42 }
 0x3ed   :  { %v626_v45 = vmul.f32 1.442695, %v988_v40 }
 0x3ee   :  { %v991_v46 = vadd.f32 -2.0820894, %v777_v43  ;;  %v927_v21 = vadd.f32 %v926_v44, %v925_v39  ;;  %v828_v50 = vadd.f32 %v827_v20, %v1607_v26 }
 0x3ef   :  { %v1239_v27 = vpop.eup %1238  ;;  %1244 = vpow2.f32 %v626_v45 }
 0x3f0   :  { %v674_v48 = vmul.f32 0.6931472, %v1239_v27  ;;  %1246 = vlog2.f32 %v927_v21  ;;  %v779_v18 = vmul.f32 1.442695, %v991_v46  ;;  %v992_v53 = vadd.f32 -2.0820894, %v828_v50 }
 0x3f2   :  { %v675_v49 = vadd.f32 %v674_v48, %v1616_v56  ;;  %1248 = vpow2.f32 %v779_v18  ;;  %v830_v38 = vmul.f32 1.442695, %v992_v53 }
 0x3f4   :  { %v1241_v23 = vpop.eup %1240  ;;  %v989_v52 = vadd.f32 -2.0820894, %v675_v49 }
 0x3f5   :  { %v878_v47 = vmul.f32 0.6931472, %v1241_v23 }
 0x3f6   :  { %v677_v55 = vmul.f32 1.442695, %v989_v52 }
 0x3f7   :  { %v879_v19 = vadd.f32 %v878_v47, %v1623_v4 }
 0x3f8   :  { %v1243_v54 = vpop.eup %1242  ;;  %1250 = vpow2.f32 %v677_v55 }
 0x3f9   :  { %v993_v57 = vadd.f32 -2.0820894, %v879_v19  ;;  %v725_v58 = vmul.f32 0.6931472, %v1243_v54 }
 0x3fb   :  { %v881_v60 = vmul.f32 1.442695, %v993_v57  ;;  %v726_v41 = vadd.f32 %v725_v58, %v1629_v11 }
 0x3fc   :  { %v1245_v56 = vpop.eup %1244 }
 0x3fd   :  { %v1247_v62 = vpop.eup %1246  ;;  %v628_v63 = vsub.f32 0.0, %v1245_v56  ;;  %1252 = vpow2.f32 %v881_v60  ;;  %v990_v26 = vadd.f32 -2.0820894, %v726_v41 }
 0x3fe   :  { %v929_v0 = vmul.f32 0.6931472, %v1247_v62  ;;  %1254 = vpow2.f32 %v830_v38 }
 0x3ff   :  { %v629_v2 = vmul.f32 %v988_v40, %v628_v63  ;;  %v728_v3 = vmul.f32 1.442695, %v990_v26  ;;  %v1249_v7 = vpop.eup %1248 }
 0x400   :  { %v930_v4 = vadd.f32 %v929_v0, %v1634_v29  ;;  %v781_v51 = vsub.f32 0.0, %v1249_v7 }
 0x401   :  { %v630_v5 = vsel %vm527_vm2, %v629_v2, 0.0  ;;  %1256 = vpow2.f32 %v728_v3 }
 0x402   :  { %631 = vadd.xlane.f32.xlu0 %v630_v5  ;;  %v994_v6 = vadd.f32 -2.0820894, %v930_v4  ;;  %v782_v15 = vmul.f32 %v991_v46, %v781_v51 }
 0x404   :  { %v932_v11 = vmul.f32 1.442695, %v994_v6  ;;  %v783_v22 = vsel %vm527_vm2, %v782_v15, 0.0 }
 0x405   :  { %v1251_v61 = vpop.eup %1250 }
 0x406   :  { %v679_v8 = vsub.f32 0.0, %v1251_v61  ;;  %1258 = vpow2.f32 %v932_v11 }
 0x408   :  { %v680_v9 = vmul.f32 %v989_v52, %v679_v8 }
 0x40a   :  { %v1253_v10 = vpop.eup %1252  ;;  %v681_v14 = vsel %vm527_vm2, %v680_v9, 0.0 }
 0x40b   :  { %682 = vadd.xlane.f32.xlu1 %v681_v14  ;;  %v883_v29 = vsub.f32 0.0, %v1253_v10  ;;  %v1255_v16 = vpop.eup %1254 }
 0x40c   :  { %v832_v24 = vsub.f32 0.0, %v1255_v16 }
 0x40d   :  { %v884_v1 = vmul.f32 %v993_v57, %v883_v29 }
 0x40e   :  { %v1257_v17 = vpop.eup %1256  ;;  %v833_v31 = vmul.f32 %v992_v53, %v832_v24 }
 0x40f   :  { %784 = vadd.xlane.f32.xlu1 %v783_v22  ;;  %v730_v12 = vsub.f32 0.0, %v1257_v17  ;;  %v885_v25 = vsel %vm527_vm2, %v884_v1, 0.0 }
 0x410   :  { %v834_v33 = vsel %vm527_vm2, %v833_v31, 0.0 }
 0x411   :  { %v731_v59 = vmul.f32 %v990_v26, %v730_v12 }
 0x413   :  { %v1259_v28 = vpop.eup %1258  ;;  %886 = vadd.xlane.f32.xlu1 %v885_v25  ;;  %v732_v30 = vsel %vm527_vm2, %v731_v59, 0.0 }
 0x414   :  { %733 = vadd.xlane.f32.xlu0 %v732_v30  ;;  %v934_v32 = vsub.f32 0.0, %v1259_v28 }
 0x416   :  { %v935_v34 = vmul.f32 %v994_v6, %v934_v32 }
 0x418   :  { %835 = vadd.xlane.f32.xlu0 %v834_v33  ;;  %v936_v13 = vsel %vm527_vm2, %v935_v34, 0.0 }
 0x41c   :  { %937 = vadd.xlane.f32.xlu0 %v936_v13 }
 0x43f   :  { %v579_v35 = vpop.xlane.xlu1 %578 }
 0x440   :  { %v939_v43 = vmax.f32 %v579_v35, -100.0 }
 0x48b   :  { %v632_v39 = vpop.xlane.xlu0 %631 }
 0x48c   :  { %v940_v46 = vmax.f32 %v939_v43, %v632_v39 }
 0x494   :  { %v683_v36 = vpop.xlane.xlu1 %682 }
 0x495   :  { %v941_v20 = vmax.f32 %v940_v46, %v683_v36 }
 0x498   :  { %v785_v40 = vpop.xlane.xlu1 %784 }
 0x499   :  { %v943_v44 = vmax.f32 %v785_v40, -100.0 }
 0x49c   :  { %v887_v27 = vpop.xlane.xlu1 %886 }
 0x49d   :  { %v734_v42 = vpop.xlane.xlu0 %733 }
 0x49e   :  { %v942_v18 = vmax.f32 %v941_v20, %v734_v42 }
 0x4a1   :  { %v836_v45 = vpop.xlane.xlu0 %835 }
 0x4a2   :  { %v944_v21 = vmax.f32 %v943_v44, %v836_v45 }
 0x4a4   :  { %v945_v48 = vmax.f32 %v944_v21, %v887_v27 }
 0x4a5   :  { %v938_v49 = vpop.xlane.xlu0 %937 }
 0x4a6   :  { %v946_v50 = vmax.f32 %v945_v48, %v938_v49 }
 0x4a8   :  { %v947_v23 = vmax.f32 %v942_v18, %v946_v50 }
 0x4aa   :  { %1260 = vrcp.f32 %v947_v23 }
 0x4b7   :  { %v1261_v52 = vpop.eup %1260 }
 0x4b8   :  { %v953_v47 = vmul.f32 %v1261_v52, %v946_v50  ;;  %v950_v55 = vmul.f32 %v1261_v52, %v942_v18 }
 0x4ba   :  { %v951_v19 = vsel %vm948_vm3, %v950_v55, 0.0 }
 0x4bb   :  { %v954_v53 = vsel %vm952_vm4, %v953_v47, %v951_v19 }
 0x4bc   :  { %955 = vst [vmem:[#allocation2] sm:$0x1] %v954_v53 }
 0x4bd   :  { %1273 = shalt.err (!%p1270_p4)
}
 0x4be   :  { %965 = dma.vmem_to_hbm [thread:$0]  %s963_s8, 16, %s1671_s6, [#allocation3]  }
 0x4bf   :  { %1282 = dma.done.wait [#allocation3], 16  }
 0x4c0   :  { %1283 = vsyncadd [#allocation3], 4294967280 }
 0x4c1   :  { %969 = vsyncpa [#allocation3], 1 }

</bundles_post_ra>
